<compile_context>
chip_gen: v7x
topology: tpu7x:2x2x1
jax: 0.10.0
libtpu: 0.0.40
codegen_flags: <defaults>
</compile_context>

<pallas_src>
import jax
import jax.numpy as jnp
from jax.experimental import pallas as pl
from jax.experimental.pallas import tpu as pltpu

_LANE = 128
_MAX_ROW_TILE = 2048       # 2048 * 128 * 4 B = 1 MiB per input per buffer
_CHUNK_ROWS = 512          # inner accumulation chunk (bounds temporaries)
_XLA_FAST_PATH_N = 16384   # below this, fused XLA wins on launch overhead


def _round_up(x, m):
    return -(-x // m) * m


def _sublane_multiple(dtype):
    # Sub-32-bit dtypes pack along sublanes; keep row tiles aligned to the
    # packed tile height so bf16/int8 inputs get clean native-dtype DMAs.
    return max(8, 32 // jnp.dtype(dtype).itemsize)


def _make_mse_partial_kernel(total_rows, row_tile, chunk, needs_mask):
    """Kernel computing a per-block (8,128) partial sum of squared errors."""
    nchunks = row_tile // chunk

    def kernel(m_ref, t_ref, out_ref):
        base = pl.program_id(0) * row_tile

        def chunk_sse(c, acc):
            r0 = c * chunk
            if not isinstance(r0, int):
                r0 = pl.multiple_of(r0, chunk)
            # Cast to f32 *inside* the kernel: HBM traffic stays in the
            # input's native dtype (halves DMA bytes for bf16 inputs).
            m = m_ref[pl.ds(r0, chunk), :].astype(jnp.float32)
            t = t_ref[pl.ds(r0, chunk), :].astype(jnp.float32)
            d = m - t
            if needs_mask:
                # Rows past the true array end hold garbage (partial last
                # block) -- zero the difference BEFORE squaring.
                ridx = base + r0 + jax.lax.broadcasted_iota(
                    jnp.int32, (chunk, _LANE), 0)
                d = jnp.where(ridx < total_rows, d, 0.0)
            d2 = d * d
            # (chunk,128)->(chunk//8,8,128) only splits the sublane-major
            # axis (layout-free); the axis-0 sum is a chain of VPU adds.
            return acc + jnp.sum(d2.reshape(-1, 8, _LANE), axis=0)

        acc0 = jnp.zeros((8, _LANE), jnp.float32)
        acc = jax.lax.fori_loop(0, nchunks, chunk_sse, acc0, unroll=True)
        out_ref[0, :, :] = acc

    return kernel


def pendulum_gaussian_loss(logits, targets):
    """Pallas implementation of PendulumGaussianLoss.forward (== MSE loss)."""
    pred_mean = logits["mean"]
    _ = logits["var"]  # unused: forward returns mse_loss before the NLL branch
    assert pred_mean.shape == targets.shape

    n = 1
    for s in pred_mean.shape:
        n *= int(s)

    # --- tiny-input fast path: one fused XLA op beats any kernel launch ---
    if n <= _XLA_FAST_PATH_N:
        d = pred_mean.astype(jnp.float32) - targets.astype(jnp.float32)
        return jnp.mean(jnp.square(d))

    flat_m = pred_mean.reshape(-1)   # bitcast, no copy; native dtype
    flat_t = targets.reshape(-1)

    rows, lane_rem = divmod(n, _LANE)
    n_main = rows * _LANE

    # Lane-dense 2D view.  When n is a multiple of 128 (the common case) this
    # is a pure bitcast -- no extra HBM pass.  Otherwise the prefix slice is
    # one unavoidable copy; the <=127-element tail is handled in XLA below.
    if lane_rem:
        main_m = flat_m[:n_main].reshape(rows, _LANE)
        main_t = flat_t[:n_main].reshape(rows, _LANE)
    else:
        main_m = flat_m.reshape(rows, _LANE)
        main_t = flat_t.reshape(rows, _LANE)

    sub = max(_sublane_multiple(pred_mean.dtype),
              _sublane_multiple(targets.dtype))

    if rows >= 2 * _CHUNK_ROWS:
        # Large path: blocks are whole multiples of the accumulation chunk,
        # capped at 1 MiB f32 per input per pipeline buffer (v5e-safe).
        row_tile = min(_MAX_ROW_TILE, _round_up(-(-rows // 2), _CHUNK_ROWS))
        chunk = _CHUNK_ROWS
    else:
        # Medium path: single-chunk blocks, still >=2 grid steps when
        # possible so v7x megacore can shard the "parallel" axis.
        row_tile = max(sub, _round_up(-(-rows // 2), sub))
        chunk = row_tile

    grid = -(-rows // row_tile)
    needs_mask = (rows % row_tile) != 0

    kernel = _make_mse_partial_kernel(rows, row_tile, chunk, needs_mask)

    partials = pl.pallas_call(
        kernel,
        out_shape=jax.ShapeDtypeStruct((grid, 8, _LANE), jnp.float32),
        grid_spec=pltpu.PrefetchScalarGridSpec(
            num_scalar_prefetch=0,
            grid=(grid,),
            in_specs=[
                pl.BlockSpec((row_tile, _LANE), lambda i: (i, 0)),
                pl.BlockSpec((row_tile, _LANE), lambda i: (i, 0)),
            ],
            out_specs=pl.BlockSpec((1, 8, _LANE), lambda i: (i, 0, 0)),
        ),
        compiler_params=pltpu.CompilerParams(
            # No carried accumulator -> grid steps are independent and can be
            # sharded across both TensorCores on v7x.
            dimension_semantics=("parallel",),
        ),
    )(main_m, main_t)

    sse = jnp.sum(partials)

    if lane_rem:
        # <=127-element lane remainder: negligible XLA scalar epilogue.
        tail_m = flat_m[n_main:].astype(jnp.float32)
        tail_t = flat_t[n_main:].astype(jnp.float32)
        sse = sse + jnp.sum(jnp.square(tail_m - tail_t))

    # Divide by the exact Python int; XLA folds the constant.
    return sse / n


if __name__ == "__main__":
    key = jax.random.PRNGKey(0)
    keys = jax.random.split(key, 8)

    def ref_mse(m, t):
        return jnp.mean(jnp.square(m.astype(jnp.float32) - t.astype(jnp.float32)))

    # 1) Model-typical tiny shape (batch=2, time=8, state_dim=32): the wrapper
    #    takes the fused-XLA fast path (launch overhead would dominate).
    B, T, D = 2, 8, 32
    pm = jax.random.normal(keys[0], (B, T, D), jnp.float32)
    tg = jax.random.normal(keys[1], (B, T, D), jnp.float32)
    var = jax.nn.softplus(jax.random.normal(keys[2], (B, T, D), jnp.float32)) + 1e-3
    loss = jax.block_until_ready(
        pendulum_gaussian_loss({"mean": pm, "var": var}, tg))
    assert jnp.allclose(loss, ref_mse(pm, tg), rtol=1e-6, atol=1e-6), loss

    # 2) Pallas path: lane-aligned, grid=2, partial last block (row masking).
    B, T, D = 2, 1000, 128
    pm = jax.random.normal(keys[3], (B, T, D), jnp.float32)
    tg = jax.random.normal(keys[4], (B, T, D), jnp.float32)
    loss = jax.block_until_ready(
        pendulum_gaussian_loss({"mean": pm, "var": jnp.ones_like(pm)}, tg))
    assert jnp.allclose(loss, ref_mse(pm, tg), rtol=1e-5, atol=1e-7), loss

    # 3) Pallas path: native bf16 inputs (no wrapper-side upcast / extra pass).
    pm16 = pm.astype(jnp.bfloat16)
    tg16 = tg.astype(jnp.bfloat16)
    loss = jax.block_until_ready(
        pendulum_gaussian_loss({"mean": pm16, "var": jnp.ones_like(pm16)}, tg16))
    assert jnp.allclose(loss, ref_mse(pm16, tg16), rtol=1e-5, atol=1e-7), loss

    # 4) Pallas path: lane-misaligned total (n % 128 != 0) + partial block --
    #    exercises the in-kernel row mask and the XLA lane-tail epilogue.
    B, T, D = 5, 250, 33
    pm = jax.random.normal(keys[5], (B, T, D), jnp.float32)
    tg = jax.random.normal(keys[6], (B, T, D), jnp.float32)
    loss = jax.block_until_ready(
        pendulum_gaussian_loss({"mean": pm, "var": jnp.ones_like(pm)}, tg))
    assert jnp.allclose(loss, ref_mse(pm, tg), rtol=1e-5, atol=1e-7), loss

    print("KERNEL_OK")
</pallas_src>

<mosaic_0001>
module attributes {stable_mosaic.version = 11 : i64} {
  func.func @kernel(%arg0: i32, %arg1: memref<1024x128xf32, #tpu.memory_space<vmem>>, %arg2: memref<1024x128xf32, #tpu.memory_space<vmem>>, %arg3: memref<1x8x128xf32, #tpu.memory_space<vmem>>) attributes {dimension_semantics = [#tpu.dimension_semantics<parallel>], iteration_bounds = array<i64: 2>, scalar_prefetch = 0 : i64, scratch_operands = 0 : i64, tpu.core_type = #tpu.core_type<tc>, window_params = [{transform_indices = @transform_0, window_bounds = array<i64: 1024, 128>}, {transform_indices = @transform_1, window_bounds = array<i64: 1024, 128>}, {transform_indices = @transform_2, window_bounds = array<i64: 1, 8, 128>}]} {
    %c1024_i32 = arith.constant 1024 : i32
    %0 = arith.muli %arg0, %c1024_i32 : i32
    %cst = arith.constant 0.000000e+00 : f32
    %1 = vector.broadcast %cst : f32 to vector<8x128xf32>
    %c0_i32 = arith.constant 0 : i32
    %c512_i32 = arith.constant 512 : i32
    %2 = arith.muli %c0_i32, %c512_i32 : i32
    %3 = tpu.assume_multiple %2, 512 : i32
    %4 = arith.index_cast %3 : i32 to index
    %c0 = arith.constant 0 : index
    %5 = vector.load %arg1[%4, %c0] : memref<1024x128xf32, #tpu.memory_space<vmem>>, vector<512x128xf32>
    %6 = arith.index_cast %3 : i32 to index
    %c0_0 = arith.constant 0 : index
    %7 = vector.load %arg2[%6, %c0_0] : memref<1024x128xf32, #tpu.memory_space<vmem>>, vector<512x128xf32>
    %8 = arith.subf %5, %7 : vector<512x128xf32>
    %9 = arith.addi %0, %3 : i32
    %10 = tpu.iota {dimensions = array<i32: 0>} : vector<512x128xi32>
    %11 = vector.broadcast %9 : i32 to vector<512x128xi32>
    %12 = arith.addi %11, %10 : vector<512x128xi32>
    %c2000_i32 = arith.constant 2000 : i32
    %13 = vector.broadcast %c2000_i32 : i32 to vector<512x128xi32>
    %14 = arith.cmpi slt, %12, %13 : vector<512x128xi32>
    %cst_1 = arith.constant 0.000000e+00 : f32
    %15 = vector.broadcast %cst_1 : f32 to vector<512x128xf32>
    %16 = arith.select %14, %8, %15 : vector<512x128xi1>, vector<512x128xf32>
    %17 = arith.mulf %16, %16 : vector<512x128xf32>
    %18 = vector.shape_cast %17 : vector<512x128xf32> to vector<64x8x128xf32>
    %cst_2 = arith.constant dense<0.000000e+00> : vector<8x128xf32>
    %19 = vector.multi_reduction <add>, %18, %cst_2 [0] : vector<64x8x128xf32> to vector<8x128xf32>
    %20 = arith.addf %1, %19 : vector<8x128xf32>
    %c1_i32 = arith.constant 1 : i32
    %c512_i32_3 = arith.constant 512 : i32
    %21 = arith.muli %c1_i32, %c512_i32_3 : i32
    %22 = tpu.assume_multiple %21, 512 : i32
    %23 = arith.index_cast %22 : i32 to index
    %c0_4 = arith.constant 0 : index
    %24 = vector.load %arg1[%23, %c0_4] : memref<1024x128xf32, #tpu.memory_space<vmem>>, vector<512x128xf32>
    %25 = arith.index_cast %22 : i32 to index
    %c0_5 = arith.constant 0 : index
    %26 = vector.load %arg2[%25, %c0_5] : memref<1024x128xf32, #tpu.memory_space<vmem>>, vector<512x128xf32>
    %27 = arith.subf %24, %26 : vector<512x128xf32>
    %28 = arith.addi %0, %22 : i32
    %29 = tpu.iota {dimensions = array<i32: 0>} : vector<512x128xi32>
    %30 = vector.broadcast %28 : i32 to vector<512x128xi32>
    %31 = arith.addi %30, %29 : vector<512x128xi32>
    %c2000_i32_6 = arith.constant 2000 : i32
    %32 = vector.broadcast %c2000_i32_6 : i32 to vector<512x128xi32>
    %33 = arith.cmpi slt, %31, %32 : vector<512x128xi32>
    %cst_7 = arith.constant 0.000000e+00 : f32
    %34 = vector.broadcast %cst_7 : f32 to vector<512x128xf32>
    %35 = arith.select %33, %27, %34 : vector<512x128xi1>, vector<512x128xf32>
    %36 = arith.mulf %35, %35 : vector<512x128xf32>
    %37 = vector.shape_cast %36 : vector<512x128xf32> to vector<64x8x128xf32>
    %cst_8 = arith.constant dense<0.000000e+00> : vector<8x128xf32>
    %38 = vector.multi_reduction <add>, %37, %cst_8 [0] : vector<64x8x128xf32> to vector<8x128xf32>
    %39 = arith.addf %20, %38 : vector<8x128xf32>
    %c2_i32 = arith.constant 2 : i32
    %c0_9 = arith.constant 0 : index
    %c0_10 = arith.constant 0 : index
    %c0_11 = arith.constant 0 : index
    %40 = vector.load %arg3[%c0_9, %c0_10, %c0_11] : memref<1x8x128xf32, #tpu.memory_space<vmem>>, vector<1x8x128xf32>
    %41 = vector.shape_cast %40 : vector<1x8x128xf32> to vector<8x128xf32>
    %42 = vector.shape_cast %39 : vector<8x128xf32> to vector<1x8x128xf32>
    tpu.vector_store %arg3[%c0_9, %c0_10, %c0_11], %42 {strides = array<i32>} : memref<1x8x128xf32, #tpu.memory_space<vmem>>, vector<1x8x128xf32>,
    return
  }
  func.func @transform_0(%arg0: i32) -> (i32, i32) {
    %c0_i32 = arith.constant 0 : i32
    %c0_i32_0 = arith.constant 0 : i32
    return %arg0, %c0_i32 : i32, i32
  }
  func.func @transform_1(%arg0: i32) -> (i32, i32) {
    %c0_i32 = arith.constant 0 : i32
    %c0_i32_0 = arith.constant 0 : i32
    return %arg0, %c0_i32 : i32, i32
  }
  func.func @transform_2(%arg0: i32) -> (i32, i32, i32) {
    %c0_i32 = arith.constant 0 : i32
    %c0_i32_0 = arith.constant 0 : i32
    %c0_i32_1 = arith.constant 0 : i32
    return %arg0, %c0_i32, %c0_i32_0 : i32, i32, i32
  }
}

</mosaic_0001>

<bundles_post_ra>
// kernel: tpu_custom_call.1
= control target key start
LH: loop header
LB: loop body
LE: loop exit
PB: predicated region body
PF: predicated region fallthrough
CT: control target
= control target key end

     0   :  { %7 = vsyncpa [#allocation3], 0  ;;  %s3247_s0 = inlined_call_operand.hbm [shape: f32[2000,128], index: 0, kind: input, shape index: {}]   ;;  %s3248_s1 = inlined_call_operand.hbm [shape: f32[2000,128], index: 1, kind: input, shape index: {}]   ;;  %s3249_s2 = inlined_call_operand.hbm [shape: f32[2,8,128], index: 2, kind: output, shape index: {}]  }
   0x1   :  { %9 = vsyncpa [#allocation3 + $0x1], 0 }
   0x2   :  { %10 = vsyncpa [#allocation6], 0 }
   0x3   :  { %12 = vsyncpa [#allocation6 + $0x1], 0 }
   0x4   :  { %13 = vsyncpa [#allocation4], 0 }
   0x5   :  { %15 = vsyncpa [#allocation4 + $0x1], 0  ;;  %s1779_s9 = smov 0   ;;  %s1781_s10 = smov 0  }
   0x6   :  { %s1783_s11 = smov 0   ;;  %s1785_s12 = smov 0  }
   0x7 LB: > { %s1800_s13 = sadd.s32 4294967295, %s1755_s12   ;;  %s1428_s14 = sadd.s32 4294967294, %s1755_s12   ;;  %s1755_s12 = sphi %s1785_s12, %s3648_s12   ;;  %s1751_s11 = sphi %s1783_s11, %s3647_s11   ;;  %s1747_s10 = sphi %s1781_s10, %s3646_s10   ;;  %s1743_s9 = sphi %s1779_s9, %s3645_s9  }
   0x8   : > { %s1804_s15 = sadd.s32 1, %s1755_s12   ;;  %s28_s16 = sadd.s32 1, %s1751_s11 }
   0x9   : > { %s25_s17 = ssub.s32 %s1755_s12, %s1804_s15  ;;  %p35_p0 = scmp.ne.s32.totalorder %s1751_s11, %s1747_s10 }
   0xa   : > { %p26_p1 = scmp.eq.s32.totalorder %s25_s17, 0  ;;  %p36_p2 = scmp.eq.s32.totalorder %s1755_s12, 0 }
   0xb   : > { %p41_p3 = scmp.ne.s32.totalorder %s1747_s10, %s1743_s9  ;;  %p42_p4 = scmp.eq.s32.totalorder %s1800_s13, 0 }
   0xc   : > { %s1816_s18 = scalar_select %p26_p1, %s1751_s11, %s28_s16  }
   0xd   : > { %p1818_p5 = por %p36_p2, %p35_p0  ;;  %p1822_p6 = por %p42_p4, %p41_p3 }
   0xe   : > { %p91_p7 = scmp.eq.s32.totalorder %s1800_s13, 1  ;;  %p97_p8 = scmp.eq.s32.totalorder %s1428_s14, 1 }
   0xf   : > { %p3250_p11 = scmp.ge.s32.totalorder %s1755_s12, 2 }
  0x10   : > { %p1827_p9 = por %p91_p7, %p35_p0  ;;  %p1831_p10 = por %p97_p8, %p41_p3 }
  0x11   : > { %113 = sbr.rel (%p3250_p11) target bundleno = 94 (0x5e), region = 16 }
  0x12   : > { %s3371_s21 = scalar_select %p1827_p9, 1, 0 }
  0x13   : > { %s3372_s22 = scalar_select %p1831_p10, 1, 0 }
  0x18   : > { %116 = sbr.rel (!%p1818_p5) target bundleno = 59 (0x3b), region = 20  ;;  %s117_s23 = sand.u32 (%p1818_p5), 1, %s1751_s11  }
  0x19   : > { %s1432_s24 = sshll.u32 (%p1818_p5), %s1755_s12, 7  ;;  %s1431_s25 = sshll.u32 (%p1818_p5), %s117_s23, 10 }
  0x1a   : > { %s123_s26 = ssub.s32 (%p1818_p5), 250, %s1432_s24  ;;  %s1845_s29 = scalar_lea.sflag (%p1818_p5), [#allocation3], %s117_s23 }
  0x1b   : > { %p124_p12 = scmp.lt.s32.totalorder (%p1818_p5), %s123_s26, 128  ;;  %s121_s30 = scalar_lea.vmem (%p1818_p5), [#allocation2], %s1431_s25 }
  0x1f   : > { %s3650_s26 = smov (!%p124_p12, %s123_s26), 128 }
  0x20   : > { %s1842_s27 = sshll.u32 %s3650_s26, 7 }
  0x21   : > { %s128_s28 = ssub.s32 16384, %s1842_s27 }
  0x22   : > { %129 = vsyncadd %s1845_s29, %s128_s28  ;;  %p1434_p13 = scmp.ne.s32.totalorder %s1842_s27, 0  ;;  %s1582_s3 = sshll.u32 %s1755_s12, 14 }
  0x23   : > { %s1853_s6 = scalar_lea.hbm %s3247_s0, %s1582_s3  ;;  %s134_s7 = sshll.u32 %s121_s30, 4  ;;  %s1855_s7 = int_to_ptr.vmem [resolvable:$true] %s134_s7 }
  0x24   : > { %s1629_s8 = scalar_lea.hbm %s1853_s6, %s1842_s27  ;;  %s1633_s17 = scalar_lea.hbm %s3247_s0, 32000 }
  0x25   : > { %p1630_p0 = scmp.ne.s32.totalorder %s1853_s6, %s1629_s8  ;;  %p1634_p3 = scmp.lt.u32.totalorder %s1853_s6, %s3247_s0 }
  0x26   : > { %p1635_p4 = scmp.lt.u32.totalorder %s1633_s17, %s1629_s8  ;;  %p1637_p8 = scmp.lt.u32.totalorder %s1629_s8, %s1853_s6 }
  0x27   : > { %p1631_p1 = pnand %p1630_p0, %p1434_p13 }
  0x28   : > { %p1636_p7 = por %p1635_p4, %p1634_p3 }
  0x29   : > { %p1632_p2 = pneg %p1631_p1 }
  0x2a   : > { %p1638_p12 = por %p1637_p8, %p1636_p7 }
  0x2c   : > { %p1639_p11 = pnand %p1638_p12, %p1632_p2 }
  0x2e   : > { %1642 = shalt.err (!%p1639_p11)
}
  0x2f   : > { %s1643_s25 = scalar_lea.vmem %s1855_s7, %s1842_s27  ;;  %s1757_s26 = smov [#allocation2]  }
  0x30   : > { %p1644_p0 = scmp.ne.s32.totalorder %s1855_s7, %s1643_s25  ;;  %s1647_s28 = sshll.u32 %s1757_s26, 4  ;;  %s1648_s28 = int_to_ptr.vmem [resolvable:$false] %s1647_s28 }
  0x31   : > { %s1649_s30 = scalar_lea.vmem %s1648_s28, 32768  ;;  %p1650_p9 = scmp.lt.s32.totalorder %s1855_s7, %s1648_s28 }
  0x32   : > { %p1645_p1 = pnand %p1644_p0, %p1434_p13  ;;  %p1651_p3 = scmp.lt.s32.totalorder %s1649_s30, %s1643_s25 }
  0x34   : > { %p1646_p10 = pneg %p1645_p1  ;;  %p1652_p4 = por %p1651_p3, %p1650_p9 }
  0x36   : > { %p1653_p7 = pnand %p1652_p4, %p1646_p10 }
  0x38   : > { %1656 = shalt.err (!%p1653_p7)
}
  0x39   : > { %s1758_s3 = smov 128   ;;  %s1759_s4 = smov 8  }
  0x3a   : > { %140 = dma.hbm_to_vmem [thread:$0]  (%p1434_p13), %s1853_s6, %s1842_s27, %s1855_s7, %s1845_s29, %s1758_s3, %s1758_s3, %s1759_s4  }
  0x3b PF: > { %143 = sbr.rel (!%p1818_p5) target bundleno = 94 (0x5e), region = 24  ;;  %s144_s5 = sand.u32 (%p1818_p5), 1, %s1751_s11  }
  0x3c   : > { %s1439_s8 = sshll.u32 (%p1818_p5), %s1755_s12, 7  ;;  %s1438_s14 = sshll.u32 (%p1818_p5), %s144_s5, 10 }
  0x3d   : > { %s150_s16 = ssub.s32 (%p1818_p5), 250, %s1439_s8  ;;  %s1889_s24 = scalar_lea.sflag (%p1818_p5), [#allocation6], %s144_s5 }
  0x3e   : > { %p151_p9 = scmp.lt.s32.totalorder (%p1818_p5), %s150_s16, 128  ;;  %s148_s27 = scalar_lea.vmem (%p1818_p5), [#allocation5], %s1438_s14 }
  0x42   : > { %s3652_s16 = smov (!%p151_p9, %s150_s16), 128 }
  0x43   : > { %s1886_s17 = sshll.u32 %s3652_s16, 7 }
  0x44   : > { %s155_s23 = ssub.s32 16384, %s1886_s17 }
  0x45   : > { %156 = vsyncadd %s1889_s24, %s155_s23  ;;  %p1441_p5 = scmp.ne.s32.totalorder %s1886_s17, 0  ;;  %s1583_s19 = sshll.u32 %s1755_s12, 14 }
  0x46   : > { %s1897_s7 = scalar_lea.hbm %s3248_s1, %s1583_s19  ;;  %s161_s25 = sshll.u32 %s148_s27, 4  ;;  %s1899_s25 = int_to_ptr.vmem [resolvable:$true] %s161_s25 }
  0x47   : > { %s1657_s26 = scalar_lea.hbm %s1897_s7, %s1886_s17  ;;  %s1661_s3 = scalar_lea.hbm %s3248_s1, 32000 }
  0x48   : > { %p1658_p10 = scmp.ne.s32.totalorder %s1897_s7, %s1657_s26  ;;  %p1662_p2 = scmp.lt.u32.totalorder %s1897_s7, %s3248_s1 }
  0x49   : > { %p1663_p8 = scmp.lt.u32.totalorder %s1661_s3, %s1657_s26  ;;  %p1665_p0 = scmp.lt.u32.totalorder %s1657_s26, %s1897_s7 }
  0x4a   : > { %p1659_p11 = pnand %p1658_p10, %p1441_p5 }
  0x4b   : > { %p1664_p12 = por %p1663_p8, %p1662_p2 }
  0x4c   : > { %p1660_p13 = pneg %p1659_p11 }
  0x4d   : > { %p1666_p1 = por %p1665_p0, %p1664_p12 }
  0x4f   : > { %p1667_p3 = pnand %p1666_p1, %p1660_p13 }
  0x51   : > { %1670 = shalt.err (!%p1667_p3)
}
  0x52   : > { %s1671_s8 = scalar_lea.vmem %s1899_s25, %s1886_s17  ;;  %s1760_s14 = smov [#allocation5]  }
  0x53   : > { %p1672_p4 = scmp.ne.s32.totalorder %s1899_s25, %s1671_s8  ;;  %s1675_s16 = sshll.u32 %s1760_s14, 4  ;;  %s1676_s16 = int_to_ptr.vmem [resolvable:$false] %s1675_s16 }
  0x54   : > { %s1677_s23 = scalar_lea.vmem %s1676_s16, 32768  ;;  %p1678_p10 = scmp.lt.s32.totalorder %s1899_s25, %s1676_s16 }
  0x55   : > { %p1673_p7 = pnand %p1672_p4, %p1441_p5  ;;  %p1679_p11 = scmp.lt.s32.totalorder %s1677_s23, %s1671_s8 }
  0x57   : > { %p1674_p9 = pneg %p1673_p7  ;;  %p1680_p2 = por %p1679_p11, %p1678_p10 }
  0x59   : > { %p1681_p8 = pnand %p1680_p2, %p1674_p9 }
  0x5b   : > { %1684 = shalt.err (!%p1681_p8)
}
  0x5c   : > { %s1761_s27 = smov 128   ;;  %s1762_s19 = smov 8  }
  0x5d   : > { %167 = dma.hbm_to_vmem [thread:$0]  (%p1441_p5), %s1897_s7, %s1886_s17, %s1899_s25, %s1889_s24, %s1761_s27, %s1761_s27, %s1762_s19  }
  0x5e PF: > { %p1445_p13 = scmp.ge.s32.totalorder %s1755_s12, 1  ;;  %p169_p12 = scmp.lt.s32.totalorder %s1755_s12, 3 }
  0x60   : > { %p170_p0 = pnand %p1445_p13, %p169_p12 }
  0x62   : > { %173 = sbr.rel (%p170_p0) target bundleno = 358 (0x166), region = 28 }
  0x69   : > { %s1929_s29 = sand.u32 1, %s1747_s10  }
  0x6a   : > { %s1446_s6 = sshll.u32 %s1929_s29, 10  ;;  %s176_s26 = scalar_lea.sflag [#allocation3], %s1929_s29 }
  0x6b   : > { %s1933_s28 = scalar_lea.vmem [#allocation2], %s1446_s6 }
  0x6c   : > { %1730 = dma.done.wait (%p1822_p6), %s176_s26, 16384  }
  0x6d   : > { %1732 = vsyncadd (%p1822_p6), %s176_s26, 4294950912  ;;  %s185_s17 = scalar_lea.sflag [#allocation6], %s1929_s29  ;;  %s1940_s24 = scalar_lea.vmem [#allocation5], %s1446_s6 }
  0x6e   : > { %1734 = dma.done.wait (%p1822_p6), %s185_s17, 16384  }
  0x6f   : > { %1736 = vsyncadd (%p1822_p6), %s185_s17, 4294950912  ;;  %v418_v0 = vlaneseq  ;;  %s1449_s7 = sshll.u32 %s1800_s13, 10  ;;  %v225_v5 = vld [vmem:[%s1933_s28] sm:$0xff]  ;;  %v226_v6 = vld [vmem:[%s1933_s28 + $0x8] sm:$0xff]  ;;  %s1448_s25 = sshll.u32 %s1929_s29, 3 }
  0x70   : > { %v1954_v3 = vstv %s1449_s7  ;;  %v289_v7 = vld [vmem:[%s1940_s24] sm:$0xff]  ;;  %v290_v8 = vld [vmem:[%s1940_s24 + $0x8] sm:$0xff]  ;;  %v227_v12 = vld [vmem:[%s1933_s28 + $0x10] sm:$0xff]  ;;  %s998_s20 = sadd.s32 512, %s1449_s7  ;;  %s1579_s30 = sshll.u32 %s1800_s13, 7 }
  0x71   : > { %v1946_v1 = vshrl.u32 %v418_v0, 7  ;;  %3373 = vst [vmem:[#allocation11_spill] sm:$0xff] %v1954_v3  ;;  %v291_v13 = vld [vmem:[%s1940_s24 + $0x10] sm:$0xff]  ;;  %v353_v16 = vsub.f32 %v225_v5, %v289_v7  ;;  %v354_v17 = vsub.f32 %v226_v6, %v290_v8  ;;  %v228_v18 = vld [vmem:[%s1933_s28 + $0x18] sm:$0xff]  ;;  %v229_v23 = vld [vmem:[%s1933_s28 + $0x20] sm:$0xff]  ;;  %s213_s3 = scalar_lea.vmem [#allocation7], %s1448_s25  ;;  %s3203_s14 = scalar_lea.hbm %s3249_s2, %s1579_s30 }
  0x72   : > { %v292_v19 = vld [vmem:[%s1940_s24 + $0x18] sm:$0xff]  ;;  %v355_v22 = vsub.f32 %v227_v12, %v291_v13  ;;  %v293_v24 = vld [vmem:[%s1940_s24 + $0x20] sm:$0xff]  ;;  %v230_v30 = vld [vmem:[%s1933_s28 + $0x28] sm:$0xff]  ;;  %s1335_s4 = sshll.u32 %s213_s3, 4  ;;  %s1322_s16 = scalar_lea.sflag [#allocation4], %s1929_s29  ;;  %s3205_s4 = int_to_ptr.vmem [resolvable:$true] %s1335_s4 }
  0x73   : > { %v1950_v2 = vadd.s32 8, %v1946_v1  ;;  %v1957_v4 = vadd.s32 16, %v1946_v1  ;;  %v1964_v9 = vadd.s32 24, %v1946_v1  ;;  %v484_v10 = vadd.s32 %v1954_v3, %v1946_v1  ;;  %v294_v31 = vld [vmem:[%s1940_s24 + $0x28] sm:$0xff]  ;;  %v231_v37 = vld [vmem:[%s1933_s28 + $0x30] sm:$0xff]  ;;  %v232_v44 = vld [vmem:[%s1933_s28 + $0x38] sm:$0xff] }
  0x74   : > { %v1973_v14 = vadd.s32 32, %v1946_v1  ;;  %v1980_v20 = vadd.s32 40, %v1946_v1  ;;  %v1987_v25 = vadd.s32 48, %v1946_v1  ;;  %v356_v27 = vsub.f32 %v228_v18, %v292_v19  ;;  %v295_v38 = vld [vmem:[%s1940_s24 + $0x30] sm:$0xff]  ;;  %v296_v45 = vld [vmem:[%s1940_s24 + $0x38] sm:$0xff]  ;;  %v233_v52 = vld [vmem:[%s1933_s28 + $0x40] sm:$0xff] }
  0x75   : > { %v485_v11 = vadd.s32 %v1954_v3, %v1950_v2  ;;  %v486_v15 = vadd.s32 %v1954_v3, %v1957_v4  ;;  %v487_v21 = vadd.s32 %v1954_v3, %v1964_v9  ;;  %vm548_vm0 = vcmp.lt.s32.totalorder %v484_v10, 2000  ;;  %v297_v53 = vld [vmem:[%s1940_s24 + $0x40] sm:$0xff]  ;;  %v234_v60 = vld [vmem:[%s1933_s28 + $0x48] sm:$0xff]  ;;  %v235_v8 = vld [vmem:[%s1933_s28 + $0x50] sm:$0xff]  ;;  %s1685_s23 = scalar_lea.vmem %s3205_s4, 128  ;;  %p3642_p5 = scmp.ne.s32.totalorder %s3371_s21, 0 }
  0x76   : > { %3374 = vst [vmem:[#allocation12_spill] sm:$0xff] %v1973_v14  ;;  %3375 = vst [vmem:[#allocation13_spill] sm:$0xff] %v1980_v20  ;;  %v488_v26 = vadd.s32 %v1954_v3, %v1973_v14  ;;  %v612_v28 = vsel %vm548_vm0, %v353_v16, 0.0  ;;  %v1994_v32 = vadd.s32 56, %v1946_v1  ;;  %v489_v33 = vadd.s32 %v1954_v3, %v1980_v20  ;;  %v298_v61 = vld [vmem:[%s1940_s24 + $0x48] sm:$0xff]  ;;  %v299_v10 = vld [vmem:[%s1940_s24 + $0x50] sm:$0xff]  ;;  %p1686_p6 = scmp.ne.s32.totalorder %s3205_s4, %s1685_s23 }
  0x77   : > { %vm549_vm1 = vcmp.lt.s32.totalorder %v485_v11, 2000  ;;  %3376 = vst [vmem:[#allocation14_spill] sm:$0xff] %v1987_v25  ;;  %vm550_vm2 = vcmp.lt.s32.totalorder %v486_v15, 2000  ;;  %vm551_vm3 = vcmp.lt.s32.totalorder %v487_v21, 2000  ;;  %v357_v34 = vsub.f32 %v229_v23, %v293_v24  ;;  %v236_v18 = vld [vmem:[%s1933_s28 + $0x58] sm:$0xff]  ;;  %v2450_v20 = vld [vmem:[%s1933_s28 + $0x170] sm:$0xff] }
  0x78   : > { %v613_v29 = vsel %vm549_vm1, %v354_v17, 0.0  ;;  %3377 = vst [vmem:[#allocation15_spill] sm:$0xff] %v1994_v32  ;;  %v1999_v35 = vadd.s32 64, %v1946_v1  ;;  %v614_v36 = vsel %vm550_vm2, %v355_v22, 0.0  ;;  %v490_v39 = vadd.s32 %v1954_v3, %v1987_v25  ;;  %v300_v19 = vld [vmem:[%s1940_s24 + $0x58] sm:$0xff]  ;;  %v2431_v25 = vld [vmem:[%s1933_s28 + $0x160] sm:$0xff]  ;;  %p1687_p1 = pnand %p1686_p6, %p3642_p5 }
  0x79   : > { %vm552_vm4 = vcmp.lt.s32.totalorder %v488_v26, 2000  ;;  %v676_v40 = vmul.f32 %v612_v28, %v612_v28  ;;  %v677_v41 = vmul.f32 %v613_v29, %v613_v29  ;;  %v358_v42 = vsub.f32 %v230_v30, %v294_v31  ;;  %v237_v28 = vld [vmem:[%s1933_s28 + $0x60] sm:$0xff]  ;;  %3459 = vst [vmem:[#allocation97_spill] sm:$0xff] %v2450_v20  ;;  %v2453_v14 = vld [vmem:[%s1940_s24 + $0x148] sm:$0xff]  ;;  %s1763_s13 = smov [#allocation7]  }
  0x7a   : > { %3378 = vst [vmem:[#allocation16_spill] sm:$0xff] %v1999_v35  ;;  %v615_v43 = vsel %vm551_vm3, %v356_v27, 0.0  ;;  %v2008_v46 = vadd.s32 72, %v1946_v1  ;;  %v491_v47 = vadd.s32 %v1954_v3, %v1994_v32  ;;  %vm553_vm5 = vcmp.lt.s32.totalorder %v489_v33, 2000  ;;  %v301_v29 = vld [vmem:[%s1940_s24 + $0x60] sm:$0xff]  ;;  %v2364_v32 = vld [vmem:[%s1940_s24 + $0x108] sm:$0xff]  ;;  %p1688_p3 = pneg %p1687_p1 }
  0x7b   : > { %v678_v48 = vmul.f32 %v614_v36, %v614_v36  ;;  %v359_v49 = vsub.f32 %v231_v37, %v295_v38  ;;  %v2013_v50 = vadd.s32 80, %v1946_v1  ;;  %v616_v51 = vsel %vm552_vm4, %v357_v34, 0.0  ;;  %v238_v38 = vld [vmem:[%s1933_s28 + $0x68] sm:$0xff]  ;;  %3444 = vst [vmem:[#allocation82_spill] sm:$0xff] %v2364_v32  ;;  %3460 = vst [vmem:[#allocation98_spill] sm:$0xff] %v2453_v14  ;;  %s1689_s27 = sshll.u32 %s1763_s13, 4  ;;  %s1690_s27 = int_to_ptr.vmem [resolvable:$false] %s1689_s27 }
  0x7c   : > { %3379 = vst [vmem:[#allocation17_spill] sm:$0xff] %v2008_v46  ;;  %v492_v54 = vadd.s32 %v1954_v3, %v1999_v35  ;;  %vm554_vm6 = vcmp.lt.s32.totalorder %v490_v39, 2000  ;;  %v679_v55 = vmul.f32 %v615_v43, %v615_v43  ;;  %v740_v56 = vadd.f32 %v677_v41, %v676_v40  ;;  %v302_v39 = vld [vmem:[%s1940_s24 + $0x68] sm:$0xff]  ;;  %s1691_s19 = scalar_lea.vmem %s1690_s27, 256  ;;  %p1692_p4 = scmp.lt.s32.totalorder %s3205_s4, %s1690_s27 }
  0x7d   : > { %3380 = vst [vmem:[#allocation18_spill] sm:$0xff] %v2013_v50  ;;  %v360_v57 = vsub.f32 %v232_v44, %v296_v45  ;;  %v2020_v58 = vadd.s32 88, %v1946_v1  ;;  %v617_v59 = vsel %vm553_vm5, %v358_v42, 0.0  ;;  %v493_v62 = vadd.s32 %v1954_v3, %v2008_v46  ;;  %v2335_v46 = vld [vmem:[%s1933_s28 + $0x118] sm:$0xff]  ;;  %v2358_v35 = vld [vmem:[%s1933_s28 + $0x128] sm:$0xff]  ;;  %p1693_p7 = scmp.lt.s32.totalorder %s1691_s19, %s1685_s23 }
  0x7e   : > { %vm555_vm7 = vcmp.lt.s32.totalorder %v491_v47, 2000  ;;  %v680_v63 = vmul.f32 %v616_v51, %v616_v51  ;;  %v741_v0 = vadd.f32 %v740_v56, %v678_v48  ;;  %v361_v5 = vsub.f32 %v233_v52, %v297_v53  ;;  %v239_v47 = vld [vmem:[%s1933_s28 + $0x70] sm:$0xff]  ;;  %v240_v56 = vld [vmem:[%s1933_s28 + $0x78] sm:$0xff]  ;;  %3440 = vst [vmem:[#allocation78_spill] sm:$0xff] %v2335_v46  ;;  %3443 = vst [vmem:[#allocation81_spill] sm:$0xff] %v2358_v35 }
  0x7f   : > { %3381 = vst [vmem:[#allocation19_spill] sm:$0xff] %v2020_v58  ;;  %v2027_v6 = vadd.s32 96, %v1946_v1  ;;  %v618_v7 = vsel %vm554_vm6, %v359_v49, 0.0  ;;  %v494_v11 = vadd.s32 %v1954_v3, %v2013_v50  ;;  %vm556_vm8 = vcmp.lt.s32.totalorder %v492_v54, 2000  ;;  %v303_v48 = vld [vmem:[%s1940_s24 + $0x70] sm:$0xff]  ;;  %v2475_v32 = vld [vmem:[%s1933_s28 + $0x188] sm:$0xff]  ;;  %p1694_p9 = por %p1693_p7, %p1692_p4 }
  0x80   : > { %v681_v12 = vmul.f32 %v617_v59, %v617_v59  ;;  %v742_v13 = vadd.f32 %v741_v0, %v679_v55  ;;  %v362_v15 = vsub.f32 %v234_v60, %v298_v61  ;;  %v2034_v16 = vadd.s32 104, %v1946_v1  ;;  %v2332_v50 = vld [vmem:[%s1933_s28 + $0x110] sm:$0xff]  ;;  %3463 = vst [vmem:[#allocation101_spill] sm:$0xff] %v2475_v32  ;;  %v2515_v35 = vld [vmem:[%s1933_s28 + $0x1a0] sm:$0xff]  ;;  %v2599_v20 = vld [vmem:[%s1940_s24 + $0x1c8] sm:$0xff] }
  0x81   : > { %3382 = vst [vmem:[#allocation20_spill] sm:$0xff] %v2027_v6  ;;  %v619_v17 = vsel %vm555_vm7, %v360_v57, 0.0  ;;  %v495_v21 = vadd.s32 %v1954_v3, %v2020_v58  ;;  %vm557_vm9 = vcmp.lt.s32.totalorder %v493_v62, 2000  ;;  %v682_v22 = vmul.f32 %v618_v7, %v618_v7  ;;  %v304_v57 = vld [vmem:[%s1940_s24 + $0x78] sm:$0xff]  ;;  %v305_v7 = vld [vmem:[%s1940_s24 + $0x80] sm:$0xff]  ;;  %v2499_v46 = vld [vmem:[%s1940_s24 + $0x170] sm:$0xff]  ;;  %p1695_p10 = pnand %p1694_p9, %p1688_p3 }
  0x82   : > { %3383 = vst [vmem:[#allocation21_spill] sm:$0xff] %v2034_v16  ;;  %v743_v23 = vadd.f32 %v742_v13, %v680_v63  ;;  %v363_v24 = vsub.f32 %v235_v8, %v299_v10  ;;  %v2041_v26 = vadd.s32 112, %v1946_v1  ;;  %v620_v27 = vsel %vm556_vm8, %v361_v5, 0.0  ;;  %v241_v5 = vld [vmem:[%s1933_s28 + $0x80] sm:$0xff]  ;;  %3468 = vst [vmem:[#allocation106_spill] sm:$0xff] %v2499_v46  ;;  %v2636_v32 = vld [vmem:[%s1940_s24 + $0x1e8] sm:$0xff] }
  0x83   : > { %v496_v30 = vadd.s32 %v1954_v3, %v2027_v6  ;;  %vm558_vm10 = vcmp.lt.s32.totalorder %v494_v11, 2000  ;;  %v683_v31 = vmul.f32 %v619_v17, %v619_v17  ;;  %v364_v34 = vsub.f32 %v236_v18, %v300_v19  ;;  %v306_v17 = vld [vmem:[%s1940_s24 + $0x88] sm:$0xff]  ;;  %v2596_v46 = vld [vmem:[%s1940_s24 + $0x1c0] sm:$0xff]  ;;  %3485 = vst [vmem:[#allocation122_spill] sm:$0xff] %v2636_v32 }
  0x84   : > { %3384 = vst [vmem:[#allocation22_spill] sm:$0xff] %v2041_v26  ;;  %v744_v33 = vadd.f32 %v743_v23, %v681_v12  ;;  %v2048_v36 = vadd.s32 120, %v1946_v1  ;;  %v621_v37 = vsel %vm557_vm9, %v362_v15, 0.0  ;;  %v497_v40 = vadd.s32 %v1954_v3, %v2034_v16  ;;  %v242_v15 = vld [vmem:[%s1933_s28 + $0x88] sm:$0xff]  ;;  %v2275_v16 = vld [vmem:[%s1933_s28 + $0xe0] sm:$0xff] }
  0x85   : > { %vm559_vm11 = vcmp.lt.s32.totalorder %v495_v21, 2000  ;;  %v684_v41 = vmul.f32 %v620_v27, %v620_v27  ;;  %v365_v43 = vsub.f32 %v237_v28, %v301_v29  ;;  %v2055_v44 = vadd.s32 128, %v1946_v1  ;;  %v243_v27 = vld [vmem:[%s1933_s28 + $0x90] sm:$0xff] }
  0x86   : > { %3385 = vst [vmem:[#allocation23_spill] sm:$0xff] %v2048_v36  ;;  %v745_v42 = vadd.f32 %v744_v33, %v682_v22  ;;  %v622_v45 = vsel %vm558_vm10, %v363_v24, 0.0  ;;  %v498_v49 = vadd.s32 %v1954_v3, %v2041_v26  ;;  %vm560_vm12 = vcmp.lt.s32.totalorder %v496_v30, 2000  ;;  %v307_v28 = vld [vmem:[%s1940_s24 + $0x90] sm:$0xff] }
  0x87   : > { %3386 = vst [vmem:[#allocation24_spill] sm:$0xff] %v2055_v44  ;;  %v685_v51 = vmul.f32 %v621_v37, %v621_v37  ;;  %v366_v53 = vsub.f32 %v238_v38, %v302_v39  ;;  %v2062_v54 = vadd.s32 136, %v1946_v1  ;;  %v623_v55 = vsel %vm559_vm11, %v364_v34, 0.0 }
  0x88   : > { %v746_v52 = vadd.f32 %v745_v42, %v683_v31  ;;  %v499_v59 = vadd.s32 %v1954_v3, %v2048_v36  ;;  %vm561_vm13 = vcmp.lt.s32.totalorder %v497_v40, 2000  ;;  %v686_v60 = vmul.f32 %v622_v45, %v622_v45  ;;  %v244_v42 = vld [vmem:[%s1933_s28 + $0x98] sm:$0xff] }
  0x89   : > { %3387 = vst [vmem:[#allocation25_spill] sm:$0xff] %v2062_v54  ;;  %v367_v62 = vsub.f32 %v239_v47, %v303_v48  ;;  %v2069_v63 = vadd.s32 144, %v1946_v1  ;;  %v624_v0 = vsel %vm560_vm12, %v365_v43, 0.0  ;;  %v500_v8 = vadd.s32 %v1954_v3, %v2055_v44  ;;  %v308_v43 = vld [vmem:[%s1940_s24 + $0x98] sm:$0xff] }
  0x8a   : > { %v747_v61 = vadd.f32 %v746_v52, %v684_v41  ;;  %vm562_vm14 = vcmp.lt.s32.totalorder %v498_v49, 2000  ;;  %v687_v10 = vmul.f32 %v623_v55, %v623_v55  ;;  %v368_v12 = vsub.f32 %v240_v56, %v304_v57  ;;  %v245_v57 = vld [vmem:[%s1933_s28 + $0xa0] sm:$0xff]  ;;  %v316_v44 = vld [vmem:[%s1940_s24 + $0xd8] sm:$0xff] }
  0x8b   : > { %3388 = vst [vmem:[#allocation26_spill] sm:$0xff] %v2069_v63  ;;  %v625_v13 = vsel %vm561_vm13, %v366_v53, 0.0  ;;  %v501_v18 = vadd.s32 %v1954_v3, %v2062_v54  ;;  %vm563_vm15 = vcmp.lt.s32.totalorder %v499_v59, 2000  ;;  %v688_v19 = vmul.f32 %v624_v0, %v624_v0  ;;  %v309_v59 = vld [vmem:[%s1940_s24 + $0xa0] sm:$0xff]  ;;  %v252_v54 = vld [vmem:[%s1933_s28 + $0xd8] sm:$0xff] }
  0x8c   : > { %v748_v11 = vadd.f32 %v747_v61, %v685_v51  ;;  %v369_v22 = vsub.f32 %v241_v5, %v305_v7  ;;  %v2080_v23 = vadd.s32 152, %v1946_v1  ;;  %v626_v24 = vsel %vm562_vm14, %v367_v62, 0.0 }
  0x8d   : > { %v502_v29 = vadd.s32 %v1954_v3, %v2069_v63  ;;  %vm564_vm0 = vcmp.lt.s32.totalorder %v500_v8, 2000  ;;  %v689_v30 = vmul.f32 %v625_v13, %v625_v13  ;;  %v370_v33 = vsub.f32 %v242_v15, %v306_v17 }
  0x8e   : > { %v749_v21 = vadd.f32 %v748_v11, %v686_v60  ;;  %3389 = vst [vmem:[#allocation27_spill] sm:$0xff] %v2080_v23  ;;  %v627_v34 = vsel %vm563_vm15, %v368_v12, 0.0  ;;  %vm565_vm1 = vcmp.lt.s32.totalorder %v501_v18, 2000  ;;  %v690_v37 = vmul.f32 %v626_v24, %v626_v24  ;;  %v310_v11 = vld [vmem:[%s1940_s24 + $0xa8] sm:$0xff]  ;;  %v311_v24 = vld [vmem:[%s1940_s24 + $0xb0] sm:$0xff] }
  0x8f   : > { %v371_v39 = vsub.f32 %v243_v27, %v307_v28  ;;  %v2087_v40 = vadd.s32 160, %v1946_v1  ;;  %v628_v41 = vsel %vm564_vm0, %v369_v22, 0.0  ;;  %v503_v45 = vadd.s32 %v1954_v3, %v2080_v23  ;;  %v247_v22 = vld [vmem:[%s1933_s28 + $0xb0] sm:$0xff] }
  0x90   : > { %v750_v31 = vadd.f32 %v749_v21, %v687_v10  ;;  %vm566_vm2 = vcmp.lt.s32.totalorder %v502_v29, 2000  ;;  %v691_v47 = vmul.f32 %v627_v34, %v627_v34  ;;  %v629_v49 = vsel %vm565_vm1, %v370_v33, 0.0  ;;  %v246_v10 = vld [vmem:[%s1933_s28 + $0xa8] sm:$0xff]  ;;  %v248_v34 = vld [vmem:[%s1933_s28 + $0xb8] sm:$0xff] }
  0x91   : > { %3390 = vst [vmem:[#allocation28_spill] sm:$0xff] %v2087_v40  ;;  %v692_v51 = vmul.f32 %v628_v41, %v628_v41  ;;  %v372_v53 = vsub.f32 %v244_v42, %v308_v43  ;;  %v2094_v55 = vadd.s32 168, %v1946_v1  ;;  %v630_v56 = vsel %vm566_vm2, %v371_v39, 0.0 }
  0x92   : > { %v751_v38 = vadd.f32 %v750_v31, %v688_v19  ;;  %v504_v60 = vadd.s32 %v1954_v3, %v2087_v40  ;;  %vm567_vm3 = vcmp.lt.s32.totalorder %v503_v45, 2000  ;;  %v693_v61 = vmul.f32 %v629_v49, %v629_v49 }
  0x93   : > { %3391 = vst [vmem:[#allocation29_spill] sm:$0xff] %v2094_v55  ;;  %v694_v0 = vmul.f32 %v630_v56, %v630_v56  ;;  %v373_v7 = vsub.f32 %v245_v57, %v309_v59  ;;  %v631_v8 = vsel %vm567_vm3, %v372_v53, 0.0  ;;  %v2103_v12 = vadd.s32 176, %v1946_v1  ;;  %v249_v56 = vld [vmem:[%s1933_s28 + $0xc0] sm:$0xff] }
  0x94   : > { %v752_v48 = vadd.f32 %v751_v38, %v689_v30  ;;  %v505_v13 = vadd.s32 %v1954_v3, %v2094_v55  ;;  %vm568_vm4 = vcmp.lt.s32.totalorder %v504_v60, 2000  ;;  %v695_v17 = vmul.f32 %v631_v8, %v631_v8  ;;  %v313_v57 = vld [vmem:[%s1940_s24 + $0xc0] sm:$0xff] }
  0x95   : > { %3392 = vst [vmem:[#allocation30_spill] sm:$0xff] %v2103_v12  ;;  %v374_v19 = vsub.f32 %v246_v10, %v310_v11  ;;  %v632_v21 = vsel %vm568_vm4, %v373_v7, 0.0  ;;  %v2110_v27 = vadd.s32 184, %v1946_v1  ;;  %v506_v28 = vadd.s32 %v1954_v3, %v2103_v12 }
  0x96   : > { %v753_v52 = vadd.f32 %v752_v48, %v690_v37  ;;  %vm569_vm5 = vcmp.lt.s32.totalorder %v505_v13, 2000  ;;  %v696_v29 = vmul.f32 %v632_v21, %v632_v21  ;;  %v375_v31 = vsub.f32 %v247_v22, %v311_v24  ;;  %v312_v37 = vld [vmem:[%s1940_s24 + $0xb8] sm:$0xff]  ;;  %v250_v21 = vld [vmem:[%s1933_s28 + $0xc8] sm:$0xff] }
  0x97   : > { %3393 = vst [vmem:[#allocation31_spill] sm:$0xff] %v2110_v27  ;;  %v633_v33 = vsel %vm569_vm5, %v374_v19, 0.0  ;;  %v2119_v38 = vadd.s32 192, %v1946_v1  ;;  %v507_v39 = vadd.s32 %v1954_v3, %v2110_v27  ;;  %vm570_vm6 = vcmp.lt.s32.totalorder %v506_v28, 2000  ;;  %v314_v22 = vld [vmem:[%s1940_s24 + $0xc8] sm:$0xff] }
  0x98   : > { %v754_v62 = vadd.f32 %v753_v52, %v691_v47  ;;  %v2124_v41 = vadd.s32 200, %v1946_v1  ;;  %v2126_v42 = vstv %s998_s20  ;;  %v2129_v43 = vadd.s32 208, %v1946_v1 }
  0x99   : > { %3394 = vst [vmem:[#allocation32_spill] sm:$0xff] %v2119_v38  ;;  %v2132_v45 = vadd.s32 216, %v1946_v1  ;;  %v697_v47 = vmul.f32 %v633_v33, %v633_v33  ;;  %v376_v49 = vsub.f32 %v248_v34, %v312_v37  ;;  %v2138_v52 = vadd.s32 232, %v1946_v1 }
  0x9a   : > { %v755_v5 = vadd.f32 %v754_v62, %v692_v51  ;;  %3395 = vst [vmem:[#allocation33_spill] sm:$0xff] %v2124_v41  ;;  %3396 = vst [vmem:[#allocation34_spill] sm:$0xff] %v2129_v43  ;;  %v2135_v51 = vadd.s32 224, %v1946_v1  ;;  %v634_v53 = vsel %vm570_vm6, %v375_v31, 0.0  ;;  %v2143_v59 = vadd.s32 240, %v1946_v1 }
  0x9b   : > { %3397 = vst [vmem:[#allocation35_spill] sm:$0xff] %v2132_v45  ;;  %3399 = vst [vmem:[#allocation37_spill] sm:$0xff] %v2138_v52  ;;  %v2146_v60 = vadd.s32 248, %v1946_v1  ;;  %vm571_vm7 = vcmp.lt.s32.totalorder %v507_v39, 2000  ;;  %v2151_v62 = vadd.s32 256, %v1946_v1  ;;  %v2160_v7 = vadd.s32 280, %v1946_v1 }
  0x9c   : > { %v756_v15 = vadd.f32 %v755_v5, %v693_v61  ;;  %3398 = vst [vmem:[#allocation36_spill] sm:$0xff] %v2135_v51  ;;  %3400 = vst [vmem:[#allocation38_spill] sm:$0xff] %v2143_v59  ;;  %v508_v61 = vadd.s32 %v1954_v3, %v2119_v38  ;;  %v2157_v5 = vadd.s32 272, %v1946_v1  ;;  %v2163_v8 = vadd.s32 288, %v1946_v1 }
  0x9d   : > { %3401 = vst [vmem:[#allocation39_spill] sm:$0xff] %v2146_v60  ;;  %3402 = vst [vmem:[#allocation40_spill] sm:$0xff] %v2151_v62  ;;  %v2166_v10 = vadd.s32 296, %v1946_v1  ;;  %v698_v11 = vmul.f32 %v634_v53, %v634_v53  ;;  %v635_v19 = vsel %vm571_vm7, %v376_v49, 0.0  ;;  %v2177_v24 = vadd.s32 320, %v1946_v1 }
  0x9e   : > { %v757_v18 = vadd.f32 %v756_v15, %v694_v0  ;;  %v2154_v0 = vadd.s32 264, %v1946_v1  ;;  %3404 = vst [vmem:[#allocation42_spill] sm:$0xff] %v2157_v5  ;;  %3405 = vst [vmem:[#allocation43_spill] sm:$0xff] %v2160_v7  ;;  %v377_v15 = vsub.f32 %v249_v56, %v313_v57  ;;  %v2180_v28 = vadd.s32 328, %v1946_v1 }
  0x9f   : > { %3406 = vst [vmem:[#allocation44_spill] sm:$0xff] %v2163_v8  ;;  %3407 = vst [vmem:[#allocation45_spill] sm:$0xff] %v2166_v10  ;;  %vm572_vm8 = vcmp.lt.s32.totalorder %v508_v61, 2000  ;;  %v2188_v31 = vadd.s32 344, %v1946_v1  ;;  %v2191_v33 = vadd.s32 352, %v1946_v1  ;;  %v2194_v34 = vadd.s32 360, %v1946_v1 }
  0xa0   : > { %v758_v30 = vadd.f32 %v757_v18, %v695_v17  ;;  %3403 = vst [vmem:[#allocation41_spill] sm:$0xff] %v2154_v0  ;;  %v2169_v17 = vadd.s32 304, %v1946_v1  ;;  %v2172_v18 = vadd.s32 312, %v1946_v1  ;;  %3410 = vst [vmem:[#allocation48_spill] sm:$0xff] %v2177_v24  ;;  %v2197_v37 = vadd.s32 368, %v1946_v1  ;;  %v251_v61 = vld [vmem:[%s1933_s28 + $0xd0] sm:$0xff] }
  0xa1   : > { %3411 = vst [vmem:[#allocation49_spill] sm:$0xff] %v2180_v28  ;;  %3413 = vst [vmem:[#allocation51_spill] sm:$0xff] %v2188_v31  ;;  %v2200_v39 = vadd.s32 376, %v1946_v1  ;;  %v378_v49 = vsub.f32 %v250_v21, %v314_v22  ;;  %v2203_v53 = vadd.s32 384, %v1946_v1  ;;  %v2206_v56 = vadd.s32 392, %v1946_v1 }
  0xa2   : > { %v759_v48 = vadd.f32 %v758_v30, %v696_v29  ;;  %3408 = vst [vmem:[#allocation46_spill] sm:$0xff] %v2169_v17  ;;  %3409 = vst [vmem:[#allocation47_spill] sm:$0xff] %v2172_v18  ;;  %v509_v29 = vadd.s32 %v1954_v3, %v2124_v41  ;;  %v2185_v30 = vadd.s32 336, %v1946_v1  ;;  %v636_v57 = vsel %vm572_vm8, %v377_v15, 0.0  ;;  %v315_v41 = vld [vmem:[%s1940_s24 + $0xd0] sm:$0xff] }
  0xa3   : > { %3414 = vst [vmem:[#allocation52_spill] sm:$0xff] %v2191_v33  ;;  %3415 = vst [vmem:[#allocation53_spill] sm:$0xff] %v2194_v34  ;;  %v2211_v38 = vadd.s32 400, %v1946_v1  ;;  %v2214_v27 = vadd.s32 408, %v1946_v1  ;;  %v2225_v15 = vadd.s32 432, %v1946_v1  ;;  %v2228_v21 = vadd.s32 440, %v1946_v1 }
  0xa4   : > { %v760_v13 = vadd.f32 %v759_v48, %v697_v47  ;;  %3412 = vst [vmem:[#allocation50_spill] sm:$0xff] %v2185_v30  ;;  %3416 = vst [vmem:[#allocation54_spill] sm:$0xff] %v2197_v37  ;;  %v699_v47 = vmul.f32 %v635_v19, %v635_v19  ;;  %vm573_vm9 = vcmp.lt.s32.totalorder %v509_v29, 2000  ;;  %v2222_v19 = vadd.s32 424, %v1946_v1 }
  0xa5   : > { %3417 = vst [vmem:[#allocation55_spill] sm:$0xff] %v2200_v39  ;;  %3418 = vst [vmem:[#allocation56_spill] sm:$0xff] %v2203_v53  ;;  %v2231_v22 = vadd.s32 448, %v1946_v1  ;;  %v2234_v12 = vadd.s32 456, %v1946_v1  ;;  %v379_v55 = vsub.f32 %v251_v61, %v315_v41  ;;  %v2237_v40 = vadd.s32 464, %v1946_v1 }
  0xa6   : > { %v761_v48 = vadd.f32 %v760_v13, %v698_v11  ;;  %3419 = vst [vmem:[#allocation57_spill] sm:$0xff] %v2206_v56  ;;  %3420 = vst [vmem:[#allocation58_spill] sm:$0xff] %v2211_v38  ;;  %v510_v11 = vadd.s32 %v1954_v3, %v2129_v43  ;;  %v2219_v13 = vadd.s32 416, %v1946_v1  ;;  %v700_v43 = vmul.f32 %v636_v57, %v636_v57 }
  0xa7   : > { %3421 = vst [vmem:[#allocation59_spill] sm:$0xff] %v2214_v27  ;;  %3423 = vst [vmem:[#allocation61_spill] sm:$0xff] %v2222_v19  ;;  %v2240_v23 = vadd.s32 472, %v1946_v1  ;;  %v637_v63 = vsel %vm573_vm9, %v378_v49, 0.0  ;;  %v2245_v36 = vadd.s32 480, %v1946_v1  ;;  %v2248_v26 = vadd.s32 488, %v1946_v1 }
  0xa8   : > { %3422 = vst [vmem:[#allocation60_spill] sm:$0xff] %v2219_v13  ;;  %3424 = vst [vmem:[#allocation62_spill] sm:$0xff] %v2225_v15  ;;  %v762_v29 = vadd.f32 %v761_v48, %v699_v47  ;;  %v511_v41 = vadd.s32 %v1954_v3, %v2132_v45  ;;  %vm574_vm10 = vcmp.lt.s32.totalorder %v510_v11, 2000  ;;  %v2253_v47 = vadd.s32 496, %v1946_v1 }
  0xa9   : > { %3425 = vst [vmem:[#allocation63_spill] sm:$0xff] %v2228_v21  ;;  %3426 = vst [vmem:[#allocation64_spill] sm:$0xff] %v2231_v22  ;;  %v2256_v48 = vadd.s32 504, %v1946_v1  ;;  %v2260_v49 = vadd.s32 %v1954_v3, %v2135_v51  ;;  %v2264_v57 = vadd.s32 %v1954_v3, %v2138_v52  ;;  %v2268_v61 = vadd.s32 %v1954_v3, %v2143_v59 }
  0xaa   : > { %3427 = vst [vmem:[#allocation65_spill] sm:$0xff] %v2237_v40  ;;  %3428 = vst [vmem:[#allocation66_spill] sm:$0xff] %v2240_v23  ;;  %v2272_v11 = vadd.s32 %v1954_v3, %v2146_v60  ;;  %v701_v45 = vmul.f32 %v637_v63, %v637_v63  ;;  %v380_v51 = vsub.f32 %v252_v54, %v316_v44  ;;  %v638_v6 = vsel %vm574_vm10, %v379_v55, 0.0  ;;  %v2286_v60 = vld [vmem:[%s1933_s28 + $0xe8] sm:$0xff]  ;;  %v2289_v63 = vld [vmem:[%s1933_s28 + $0xf0] sm:$0xff] }
  0xab   : > { %3429 = vst [vmem:[#allocation67_spill] sm:$0xff] %v2245_v36  ;;  %3430 = vst [vmem:[#allocation68_spill] sm:$0xff] %v2248_v26  ;;  %v2279_v52 = vadd.s32 %v1954_v3, %v2151_v62  ;;  %v2283_v59 = vadd.s32 %v1954_v3, %v2154_v0  ;;  %v2296_v44 = vadd.s32 %v1954_v3, %v2157_v5  ;;  %vm575_vm11 = vcmp.lt.s32.totalorder %v511_v41, 2000  ;;  %v2310_v0 = vld [vmem:[%s1933_s28 + $0x100] sm:$0xff]  ;;  %v2313_v62 = vld [vmem:[%s1933_s28 + $0x108] sm:$0xff] }
  0xac   : > { %3431 = vst [vmem:[#allocation69_spill] sm:$0xff] %v2253_v47  ;;  %3432 = vst [vmem:[#allocation70_spill] sm:$0xff] %v2256_v48  ;;  %v763_v48 = vadd.f32 %v762_v29, %v700_v43  ;;  %v2292_v43 = vld [vmem:[%s1940_s24 + $0xe0] sm:$0xff]  ;;  %v2300_v54 = vadd.s32 %v1954_v3, %v2160_v7  ;;  %v2304_v55 = vadd.s32 %v1954_v3, %v2163_v8  ;;  %v2307_v29 = vld [vmem:[%s1933_s28 + $0xf8] sm:$0xff]  ;;  %vm576_vm12 = vcmp.lt.s32.totalorder %v2260_v49, 2000 }
  0xad   : > { %3433 = vst [vmem:[#allocation71_spill] sm:$0xff] %v2296_v44  ;;  %v2317_v5 = vadd.s32 %v1954_v3, %v2166_v10  ;;  %v2321_v7 = vadd.s32 %v1954_v3, %v2169_v17  ;;  %v2325_v8 = vadd.s32 %v1954_v3, %v2172_v18  ;;  %v2329_v58 = vadd.s32 %v1954_v3, %v2177_v24  ;;  %v2338_v10 = vld [vmem:[%s1940_s24 + $0xe8] sm:$0xff]  ;;  %v2344_v17 = vld [vmem:[%s1940_s24 + $0xf8] sm:$0xff]  ;;  %v2456_v44 = vld [vmem:[%s1940_s24 + $0x150] sm:$0xff] }
  0xae   : > { %3434 = vst [vmem:[#allocation72_spill] sm:$0xff] %v2300_v54  ;;  %3435 = vst [vmem:[#allocation73_spill] sm:$0xff] %v2304_v55  ;;  %v2348_v18 = vadd.s32 %v1954_v3, %v2180_v28  ;;  %v2352_v24 = vadd.s32 %v1954_v3, %v2185_v30  ;;  %v2361_v55 = vld [vmem:[%s1940_s24 + $0x100] sm:$0xff]  ;;  %v381_v28 = vsub.f32 %v2275_v16, %v2292_v43  ;;  %v2387_v16 = vld [vmem:[%s1940_s24 + $0x110] sm:$0xff]  ;;  %vm577_vm13 = vcmp.lt.s32.totalorder %v2264_v57, 2000 }
  0xaf   : > { %3436 = vst [vmem:[#allocation74_spill] sm:$0xff] %v2317_v5  ;;  %3437 = vst [vmem:[#allocation75_spill] sm:$0xff] %v2321_v7  ;;  %v2341_v5 = vld [vmem:[%s1940_s24 + $0xf0] sm:$0xff]  ;;  %v2355_v7 = vld [vmem:[%s1933_s28 + $0x120] sm:$0xff]  ;;  %v2370_v30 = vadd.s32 %v1954_v3, %v2188_v31  ;;  %v2402_v41 = vadd.s32 %v1954_v3, %v2200_v39  ;;  %v2489_v49 = vadd.s32 %v1954_v3, %v2211_v38  ;;  %vm578_vm14 = vcmp.lt.s32.totalorder %v2268_v61, 2000 }
  0xb0   : > { %3438 = vst [vmem:[#allocation76_spill] sm:$0xff] %v2325_v8  ;;  %3439 = vst [vmem:[#allocation77_spill] sm:$0xff] %v2329_v58  ;;  %v702_v58 = vmul.f32 %v638_v6, %v638_v6  ;;  %v764_v8 = vadd.f32 %v763_v48, %v701_v45  ;;  %v2374_v6 = vadd.s32 %v1954_v3, %v2191_v33  ;;  %v639_v45 = vsel %vm575_vm11, %v380_v51, 0.0  ;;  %v2378_v48 = vld [vmem:[%s1933_s28 + $0x130] sm:$0xff]  ;;  %v2390_v43 = vld [vmem:[%s1940_s24 + $0x118] sm:$0xff] }
  0xb1   : > { %3441 = vst [vmem:[#allocation79_spill] sm:$0xff] %v2348_v18  ;;  %3442 = vst [vmem:[#allocation80_spill] sm:$0xff] %v2352_v24  ;;  %v2381_v24 = vld [vmem:[%s1933_s28 + $0x138] sm:$0xff]  ;;  %v2384_v18 = vld [vmem:[%s1933_s28 + $0x140] sm:$0xff]  ;;  %v2394_v33 = vadd.s32 %v1954_v3, %v2194_v34  ;;  %v2398_v51 = vadd.s32 %v1954_v3, %v2197_v37  ;;  %v382_v37 = vsub.f32 %v2286_v60, %v2338_v10  ;;  %vm579_vm15 = vcmp.lt.s32.totalorder %v2272_v11, 2000 }
  0xb2   : > { %3445 = vst [vmem:[#allocation83_spill] sm:$0xff] %v2370_v30  ;;  %3446 = vst [vmem:[#allocation84_spill] sm:$0xff] %v2374_v6  ;;  %v2406_v31 = vld [vmem:[%s1933_s28 + $0x148] sm:$0xff]  ;;  %v2409_v6 = vld [vmem:[%s1933_s28 + $0x150] sm:$0xff]  ;;  %v2622_v14 = vadd.s32 %v1954_v3, %v2228_v21  ;;  %v2646_v61 = vadd.s32 %v1954_v3, %v2231_v22  ;;  %v1001_v21 = vadd.s32 %v2126_v42, %v1950_v2  ;;  %vm580_vm0 = vcmp.lt.s32.totalorder %v2279_v52, 2000 }
  0xb3   : > { %3447 = vst [vmem:[#allocation85_spill] sm:$0xff] %v2381_v24  ;;  %3448 = vst [vmem:[#allocation86_spill] sm:$0xff] %v2384_v18  ;;  %v2412_v30 = vld [vmem:[%s1940_s24 + $0x120] sm:$0xff]  ;;  %v2415_v34 = vld [vmem:[%s1940_s24 + $0x128] sm:$0xff]  ;;  %v2687_v2 = vadd.s32 %v1954_v3, %v2237_v40  ;;  %vm581_vm1 = vcmp.lt.s32.totalorder %v2283_v59, 2000 }
  0xb4   : > { %3449 = vst [vmem:[#allocation87_spill] sm:$0xff] %v2390_v43  ;;  %3450 = vst [vmem:[#allocation88_spill] sm:$0xff] %v2394_v33  ;;  %v2428_v33 = vld [vmem:[%s1933_s28 + $0x158] sm:$0xff]  ;;  %v2434_v54 = vld [vmem:[%s1940_s24 + $0x130] sm:$0xff]  ;;  %vm1065_vm3 = vcmp.lt.s32.totalorder %v1001_v21, 2000 }
  0xb5   : > { %3451 = vst [vmem:[#allocation89_spill] sm:$0xff] %v2398_v51  ;;  %3452 = vst [vmem:[#allocation90_spill] sm:$0xff] %v2402_v41  ;;  %v2425_v51 = vadd.s32 %v1954_v3, %v2203_v53  ;;  %v2437_v60 = vld [vmem:[%s1940_s24 + $0x138] sm:$0xff]  ;;  %v2440_v10 = vld [vmem:[%s1940_s24 + $0x140] sm:$0xff]  ;;  %v703_v53 = vmul.f32 %v639_v45, %v639_v45 }
  0xb6   : > { %3453 = vst [vmem:[#allocation91_spill] sm:$0xff] %v2412_v30  ;;  %3454 = vst [vmem:[#allocation92_spill] sm:$0xff] %v2415_v34  ;;  %v2447_v47 = vld [vmem:[%s1933_s28 + $0x168] sm:$0xff]  ;;  %v2469_v45 = vld [vmem:[%s1933_s28 + $0x178] sm:$0xff] }
  0xb7   : > { %3455 = vst [vmem:[#allocation93_spill] sm:$0xff] %v2425_v51  ;;  %3456 = vst [vmem:[#allocation94_spill] sm:$0xff] %v2434_v54  ;;  %v765_v51 = vadd.f32 %v764_v8, %v702_v58  ;;  %v2464_v58 = vadd.s32 %v1954_v3, %v2206_v56  ;;  %v640_v8 = vsel %vm576_vm12, %v381_v28, 0.0  ;;  %v2472_v39 = vld [vmem:[%s1933_s28 + $0x180] sm:$0xff]  ;;  %v2478_v41 = vld [vmem:[%s1940_s24 + $0x158] sm:$0xff] }
  0xb8   : > { %3457 = vst [vmem:[#allocation95_spill] sm:$0xff] %v2437_v60  ;;  %3458 = vst [vmem:[#allocation96_spill] sm:$0xff] %v2440_v10  ;;  %v2481_v26 = vld [vmem:[%s1940_s24 + $0x160] sm:$0xff]  ;;  %v2496_v43 = vld [vmem:[%s1940_s24 + $0x168] sm:$0xff] }
  0xb9   : > { %3461 = vst [vmem:[#allocation99_spill] sm:$0xff] %v2456_v44  ;;  %3462 = vst [vmem:[#allocation100_spill] sm:$0xff] %v2464_v58  ;;  %v2493_v58 = vld [vmem:[%s1933_s28 + $0x190] sm:$0xff]  ;;  %v2512_v34 = vld [vmem:[%s1933_s28 + $0x198] sm:$0xff] }
  0xba   : > { %3464 = vst [vmem:[#allocation102_spill] sm:$0xff] %v2478_v41  ;;  %3465 = vst [vmem:[#allocation103_spill] sm:$0xff] %v2481_v26  ;;  %v2518_v30 = vld [vmem:[%s1940_s24 + $0x178] sm:$0xff]  ;;  %v2521_v56 = vld [vmem:[%s1940_s24 + $0x180] sm:$0xff] }
  0xbb   : > { %3466 = vst [vmem:[#allocation104_spill] sm:$0xff] %v2489_v49  ;;  %3467 = vst [vmem:[#allocation105_spill] sm:$0xff] %v2496_v43  ;;  %v2509_v49 = vadd.s32 %v1954_v3, %v2214_v27  ;;  %v2524_v54 = vld [vmem:[%s1940_s24 + $0x188] sm:$0xff]  ;;  %v704_v27 = vmul.f32 %v640_v8, %v640_v8  ;;  %v2534_v18 = vld [vmem:[%s1933_s28 + $0x1b0] sm:$0xff] }
  0xbc   : > { %3470 = vst [vmem:[#allocation108_spill] sm:$0xff] %v2521_v56  ;;  %3471 = vst [vmem:[#allocation109_spill] sm:$0xff] %v2524_v54  ;;  %v2531_v10 = vld [vmem:[%s1933_s28 + $0x1a8] sm:$0xff]  ;;  %v2537_v60 = vld [vmem:[%s1933_s28 + $0x1b8] sm:$0xff]  ;;  %v1000_v56 = vadd.s32 %v2126_v42, %v1946_v1 }
  0xbd   : > { %3469 = vst [vmem:[#allocation107_spill] sm:$0xff] %v2509_v49  ;;  %v766_v49 = vadd.f32 %v765_v51, %v703_v53  ;;  %3472 = vst [vmem:[#allocation110_spill] sm:$0xff] %v2534_v18  ;;  %v2540_v24 = vld [vmem:[%s1940_s24 + $0x190] sm:$0xff]  ;;  %v2548_v53 = vadd.s32 %v1954_v3, %v2219_v13  ;;  %v641_v51 = vsel %vm577_vm13, %v382_v37, 0.0  ;;  %v2553_v8 = vld [vmem:[%s1933_s28 + $0x1c0] sm:$0xff]  ;;  %v2573_v37 = vadd.s32 %v1954_v3, %v2222_v19 }
  0xbe   : > { %3473 = vst [vmem:[#allocation111_spill] sm:$0xff] %v2537_v60  ;;  %3474 = vst [vmem:[#allocation112_spill] sm:$0xff] %v2540_v24  ;;  %v2556_v28 = vld [vmem:[%s1933_s28 + $0x1c8] sm:$0xff]  ;;  %v2559_v44 = vld [vmem:[%s1933_s28 + $0x1d0] sm:$0xff]  ;;  %v705_v57 = vmul.f32 %v641_v51, %v641_v51  ;;  %vm1064_vm2 = vcmp.lt.s32.totalorder %v1000_v56, 2000 }
  0xbf   : > { %3475 = vst [vmem:[#allocation113_spill] sm:$0xff] %v2548_v53  ;;  %v2562_v38 = vld [vmem:[%s1940_s24 + $0x198] sm:$0xff]  ;;  %v2565_v41 = vld [vmem:[%s1940_s24 + $0x1a0] sm:$0xff]  ;;  %3476 = vst [vmem:[#allocation114_spill] sm:$0xff] %v2573_v37  ;;  %v2593_v37 = vadd.s32 %v1954_v3, %v2225_v15  ;;  %v767_v19 = vadd.f32 %v766_v49, %v704_v27  ;;  %v3483_v27 = vsub.f32 %v2289_v63, %v2341_v5 }
  0xc0   : > { %v2577_v13 = vld [vmem:[%s1940_s24 + $0x1a8] sm:$0xff]  ;;  %v2580_v53 = vld [vmem:[%s1940_s24 + $0x1b0] sm:$0xff]  ;;  %v2583_v26 = vld [vmem:[%s1940_s24 + $0x1b8] sm:$0xff]  ;;  %3482 = vst [vmem:[#allocation120_spill] sm:$0xff] %v2622_v14  ;;  %v3489_v5 = vsub.f32 %v2307_v29, %v2344_v17  ;;  %v2681_v29 = vadd.s32 %v1954_v3, %v2234_v12 }
  0xc1   : > { %3477 = vst [vmem:[#allocation115_spill] sm:$0xff] %v2580_v53  ;;  %3478 = vst [vmem:[#allocation116_spill] sm:$0xff] %v2583_v26  ;;  %v2602_v43 = vld [vmem:[%s1940_s24 + $0x1d0] sm:$0xff]  ;;  %v2608_v54 = vld [vmem:[%s1933_s28 + $0x1d8] sm:$0xff]  ;;  %v642_v49 = vsel %vm578_vm14, %v3483_v27, 0.0 }
  0xc2   : > { %3479 = vst [vmem:[#allocation117_spill] sm:$0xff] %v2593_v37  ;;  %v2611_v15 = vld [vmem:[%s1933_s28 + $0x1e0] sm:$0xff]  ;;  %v2614_v37 = vld [vmem:[%s1933_s28 + $0x1e8] sm:$0xff]  ;;  %v2630_v51 = vld [vmem:[%s1940_s24 + $0x1d8] sm:$0xff]  ;;  %v643_v22 = vsel %vm579_vm15, %v3489_v5, 0.0  ;;  %v706_v60 = vmul.f32 %v642_v49, %v642_v49  ;;  %v1002_v5 = vadd.s32 %v2126_v42, %v1957_v4  ;;  %v2705_v4 = vadd.s32 %v1954_v3, %v2245_v36 }
  0xc3   : > { %3480 = vst [vmem:[#allocation118_spill] sm:$0xff] %v2611_v15  ;;  %3481 = vst [vmem:[#allocation119_spill] sm:$0xff] %v2614_v37  ;;  %v2633_v24 = vld [vmem:[%s1940_s24 + $0x1e0] sm:$0xff]  ;;  %v2649_v63 = vld [vmem:[%s1933_s28 + $0x1f0] sm:$0xff]  ;;  %v2701_v37 = vadd.s32 %v1954_v3, %v2240_v23 }
  0xc4   : > { %3484 = vst [vmem:[#allocation121_spill] sm:$0xff] %v2633_v24  ;;  %3486 = vst [vmem:[#allocation123_spill] sm:$0xff] %v2646_v61  ;;  %v2652_v27 = vld [vmem:[%s1940_s24 + $0x1f0] sm:$0xff]  ;;  %v1450_v26 = vld [vmem:[%s1933_s28 + $0x200] sm:$0xff]  ;;  %v768_v61 = vadd.f32 %v767_v19, %v705_v57  ;;  %v707_v19 = vmul.f32 %v643_v22, %v643_v22  ;;  %vm1066_vm5 = vcmp.lt.s32.totalorder %v1002_v5, 2000 }
  0xc5   : > { %3487 = vst [vmem:[#allocation124_spill] sm:$0xff] %v2649_v63  ;;  %3488 = vst [vmem:[#allocation125_spill] sm:$0xff] %v2652_v27  ;;  %v1451_v53 = vld [vmem:[%s1933_s28 + $0x208] sm:$0xff]  ;;  %v1514_v18 = vld [vmem:[%s1940_s24 + $0x200] sm:$0xff]  ;;  %v1003_v63 = vadd.s32 %v2126_v42, %v1964_v9 }
  0xc6   : > { %v1515_v14 = vld [vmem:[%s1940_s24 + $0x208] sm:$0xff]  ;;  %v1452_v57 = vld [vmem:[%s1933_s28 + $0x210] sm:$0xff]  ;;  %v934_v11 = vsub.f32 %v1450_v26, %v1514_v18  ;;  %v769_v32 = vadd.f32 %v768_v61, %v706_v60  ;;  %v1453_v1 = vld [vmem:[%s1933_s28 + $0x218] sm:$0xff] }
  0xc7   : > { %v1516_v49 = vld [vmem:[%s1940_s24 + $0x210] sm:$0xff]  ;;  %v935_v17 = vsub.f32 %v1451_v53, %v1515_v14  ;;  %v1517_v27 = vld [vmem:[%s1940_s24 + $0x218] sm:$0xff]  ;;  %v3490_v14 = vsub.f32 %v2310_v0, %v2361_v55  ;;  %v1454_v22 = vld [vmem:[%s1933_s28 + $0x220] sm:$0xff]  ;;  %vm1067_vm6 = vcmp.lt.s32.totalorder %v1003_v63, 2000  ;;  %v3502_v63 = vsub.f32 %v2332_v50, %v2387_v16 }
  0xc8   : > { %v936_v18 = vsub.f32 %v1452_v57, %v1516_v49  ;;  %v3491_v9 = vld [vmem:[#allocation68_spill] sm:$0xff]  ;;  %v3493_v21 = vld [vmem:[#allocation71_spill] sm:$0xff]  ;;  %v1518_v60 = vld [vmem:[%s1940_s24 + $0x220] sm:$0xff]  ;;  %v937_v57 = vsub.f32 %v1453_v1, %v1517_v27  ;;  %v1128_v49 = vsel %vm1064_vm2, %v934_v11, 0.0  ;;  %v770_v36 = vadd.f32 %v769_v32, %v707_v19 }
  0xc9   : > { %v644_v26 = vsel %vm580_vm0, %v3490_v14, 0.0  ;;  %v2714_v56 = vadd.s32 %v1954_v3, %v3491_v9  ;;  %vm582_vm4 = vcmp.lt.s32.totalorder %v3493_v21, 2000  ;;  %v3494_v53 = vld [vmem:[#allocation12_spill] sm:$0xff]  ;;  %v3495_v0 = vld [vmem:[#allocation82_spill] sm:$0xff]  ;;  %v1129_v14 = vsel %vm1065_vm3, %v935_v17, 0.0  ;;  %v3497_v24 = vld [vmem:[#allocation13_spill] sm:$0xff] }
  0xca   : > { %v1004_v61 = vadd.s32 %v2126_v42, %v3494_v53  ;;  %v3496_v55 = vsub.f32 %v2313_v62, %v3495_v0  ;;  %v708_v9 = vmul.f32 %v644_v26, %v644_v26  ;;  %v1455_v23 = vld [vmem:[%s1933_s28 + $0x228] sm:$0xff]  ;;  %v1005_v15 = vadd.s32 %v2126_v42, %v3497_v24  ;;  %v3498_v53 = vld [vmem:[#allocation69_spill] sm:$0xff]  ;;  %v3500_v62 = vld [vmem:[#allocation72_spill] sm:$0xff] }
  0xcb   : > { %3492 = vst [vmem:[#allocation126_spill] sm:$0xff] %v2714_v56  ;;  %v1519_v40 = vld [vmem:[%s1940_s24 + $0x228] sm:$0xff]  ;;  %v2732_v5 = vadd.s32 %v1954_v3, %v3498_v53  ;;  %vm583_vm7 = vcmp.lt.s32.totalorder %v3500_v62, 2000  ;;  %v938_v59 = vsub.f32 %v1454_v22, %v1518_v60  ;;  %v1130_v27 = vsel %vm1066_vm5, %v936_v18, 0.0  ;;  %v1456_v11 = vld [vmem:[%s1933_s28 + $0x230] sm:$0xff]  ;;  %v1457_v60 = vld [vmem:[%s1933_s28 + $0x238] sm:$0xff] }
  0xcc   : > { %v645_v52 = vsel %vm581_vm1, %v3496_v55, 0.0  ;;  %v1520_v17 = vld [vmem:[%s1940_s24 + $0x230] sm:$0xff]  ;;  %v3501_v1 = vld [vmem:[#allocation14_spill] sm:$0xff]  ;;  %vm1068_vm8 = vcmp.lt.s32.totalorder %v1004_v61, 2000  ;;  %v1192_v19 = vmul.f32 %v1128_v49, %v1128_v49  ;;  %v1193_v24 = vmul.f32 %v1129_v14, %v1129_v14  ;;  %v1521_v53 = vld [vmem:[%s1940_s24 + $0x238] sm:$0xff] }
  0xcd   : > { %3499 = vst [vmem:[#allocation71_spill] sm:$0xff] %v2732_v5  ;;  %v1006_v32 = vadd.s32 %v2126_v42, %v3501_v1  ;;  %v646_v26 = vsel %vm582_vm4, %v3502_v63, 0.0  ;;  %v709_v0 = vmul.f32 %v645_v52, %v645_v52  ;;  %v939_v55 = vsub.f32 %v1455_v23, %v1519_v40  ;;  %v3503_v3 = vld [vmem:[#allocation15_spill] sm:$0xff]  ;;  %v3504_v5 = vld [vmem:[#allocation73_spill] sm:$0xff]  ;;  %v3505_v14 = vld [vmem:[#allocation78_spill] sm:$0xff] }
  0xce   : > { %v1131_v22 = vsel %vm1067_vm6, %v937_v57, 0.0  ;;  %v771_v18 = vadd.f32 %v770_v36, %v708_v9  ;;  %v1007_v1 = vadd.s32 %v2126_v42, %v3503_v3  ;;  %vm1069_vm9 = vcmp.lt.s32.totalorder %v1005_v15, 2000  ;;  %v3506_v50 = vld [vmem:[#allocation87_spill] sm:$0xff]  ;;  %v1458_v40 = vld [vmem:[%s1933_s28 + $0x240] sm:$0xff]  ;;  %v3508_v52 = vld [vmem:[#allocation16_spill] sm:$0xff] }
  0xcf   : > { %v1194_v49 = vmul.f32 %v1130_v27, %v1130_v27  ;;  %vm584_vm10 = vcmp.lt.s32.totalorder %v3504_v5, 2000  ;;  %v3507_v16 = vsub.f32 %v3505_v14, %v3506_v50  ;;  %v940_v23 = vsub.f32 %v1456_v11, %v1520_v17  ;;  %v1522_v9 = vld [vmem:[%s1940_s24 + $0x240] sm:$0xff]  ;;  %v1459_v11 = vld [vmem:[%s1933_s28 + $0x248] sm:$0xff] }
  0xd0   : > { %v1132_v36 = vsel %vm1068_vm8, %v938_v59, 0.0  ;;  %v1008_v3 = vadd.s32 %v2126_v42, %v3508_v52  ;;  %vm1070_vm11 = vcmp.lt.s32.totalorder %v1006_v32, 2000  ;;  %v1195_v15 = vmul.f32 %v1131_v22, %v1131_v22  ;;  %v3509_v14 = vld [vmem:[#allocation17_spill] sm:$0xff]  ;;  %v1523_v61 = vld [vmem:[%s1940_s24 + $0x248] sm:$0xff]  ;;  %v3511_v22 = vld [vmem:[#allocation91_spill] sm:$0xff] }
  0xd1   : > { %v647_v21 = vsel %vm583_vm7, %v3507_v16, 0.0  ;;  %v1256_v57 = vadd.f32 %v1193_v24, %v1192_v19  ;;  %v710_v27 = vmul.f32 %v646_v26, %v646_v26  ;;  %v941_v63 = vsub.f32 %v1457_v60, %v1521_v53  ;;  %v3510_v56 = vld [vmem:[#allocation74_spill] sm:$0xff]  ;;  %v1460_v26 = vld [vmem:[%s1933_s28 + $0x250] sm:$0xff]  ;;  %v1461_v32 = vld [vmem:[%s1933_s28 + $0x258] sm:$0xff] }
  0xd2   : > { %v1009_v62 = vadd.s32 %v2126_v42, %v3509_v14  ;;  %v1133_v50 = vsel %vm1069_vm9, %v939_v55, 0.0  ;;  %v772_v16 = vadd.f32 %v771_v18, %v709_v0  ;;  %vm1071_vm12 = vcmp.lt.s32.totalorder %v1007_v1, 2000  ;;  %v1524_v0 = vld [vmem:[%s1940_s24 + $0x250] sm:$0xff]  ;;  %v3513_v55 = vld [vmem:[#allocation18_spill] sm:$0xff] }
  0xd3   : > { %v1196_v59 = vmul.f32 %v1132_v36, %v1132_v36  ;;  %v1257_v17 = vadd.f32 %v1256_v57, %v1194_v49  ;;  %vm585_vm13 = vcmp.lt.s32.totalorder %v3510_v56, 2000  ;;  %v3512_v52 = vsub.f32 %v2355_v7, %v3511_v22  ;;  %v3514_v7 = vld [vmem:[#allocation19_spill] sm:$0xff] }
  0xd4   : > { %v942_v19 = vsub.f32 %v1458_v40, %v1522_v9  ;;  %v1134_v24 = vsel %vm1070_vm11, %v940_v23, 0.0  ;;  %v1010_v18 = vadd.s32 %v2126_v42, %v3513_v55  ;;  %vm1072_vm14 = vcmp.lt.s32.totalorder %v1008_v3, 2000  ;;  %v1525_v23 = vld [vmem:[%s1940_s24 + $0x258] sm:$0xff]  ;;  %v1463_v3 = vld [vmem:[%s1933_s28 + $0x268] sm:$0xff] }
  0xd5   : > { %v648_v53 = vsel %vm584_vm10, %v3512_v52, 0.0  ;;  %v1197_v60 = vmul.f32 %v1133_v50, %v1133_v50  ;;  %v1258_v49 = vadd.f32 %v1257_v17, %v1195_v15  ;;  %v711_v36 = vmul.f32 %v647_v21, %v647_v21  ;;  %v3515_v52 = vld [vmem:[#allocation75_spill] sm:$0xff]  ;;  %v3516_v50 = vld [vmem:[#allocation81_spill] sm:$0xff]  ;;  %v3517_v55 = vld [vmem:[#allocation92_spill] sm:$0xff] }
  0xd6   : > { %v943_v57 = vsub.f32 %v1459_v11, %v1523_v61  ;;  %v1011_v5 = vadd.s32 %v2126_v42, %v3514_v7  ;;  %v1135_v14 = vsel %vm1071_vm12, %v941_v63, 0.0  ;;  %v773_v40 = vadd.f32 %v772_v16, %v710_v27  ;;  %v1462_v63 = vld [vmem:[%s1933_s28 + $0x260] sm:$0xff]  ;;  %v3519_v16 = vld [vmem:[#allocation20_spill] sm:$0xff] }
  0xd7   : > { %vm1073_vm15 = vcmp.lt.s32.totalorder %v1009_v62, 2000  ;;  %v1198_v9 = vmul.f32 %v1134_v24, %v1134_v24  ;;  %v1259_v22 = vadd.f32 %v1258_v49, %v1196_v59  ;;  %vm586_vm0 = vcmp.lt.s32.totalorder %v3515_v52, 2000  ;;  %v1526_v27 = vld [vmem:[%s1940_s24 + $0x260] sm:$0xff] }
  0xd8   : > { %v3518_v15 = vsub.f32 %v3516_v50, %v3517_v55  ;;  %v944_v11 = vsub.f32 %v1460_v26, %v1524_v0  ;;  %v1136_v1 = vsel %vm1072_vm14, %v942_v19, 0.0  ;;  %v1012_v61 = vadd.s32 %v2126_v42, %v3519_v16  ;;  %v3520_v7 = vld [vmem:[#allocation21_spill] sm:$0xff]  ;;  %v1527_v19 = vld [vmem:[%s1940_s24 + $0x268] sm:$0xff] }
  0xd9   : > { %vm1074_vm1 = vcmp.lt.s32.totalorder %v1010_v18, 2000  ;;  %v1199_v59 = vmul.f32 %v1135_v14, %v1135_v14  ;;  %v1260_v17 = vadd.f32 %v1259_v22, %v1197_v60  ;;  %v712_v24 = vmul.f32 %v648_v53, %v648_v53  ;;  %v3522_v14 = vld [vmem:[#allocation94_spill] sm:$0xff]  ;;  %v1465_v18 = vld [vmem:[%s1933_s28 + $0x278] sm:$0xff] }
  0xda   : > { %v649_v21 = vsel %vm585_vm13, %v3518_v15, 0.0  ;;  %v945_v49 = vsub.f32 %v1461_v32, %v1525_v23  ;;  %v1013_v56 = vadd.s32 %v2126_v42, %v3520_v7  ;;  %v1137_v50 = vsel %vm1073_vm15, %v943_v57, 0.0  ;;  %v3521_v15 = vld [vmem:[#allocation76_spill] sm:$0xff]  ;;  %v1464_v57 = vld [vmem:[%s1933_s28 + $0x270] sm:$0xff] }
  0xdb   : > { %v774_v26 = vadd.f32 %v773_v40, %v711_v36  ;;  %vm1075_vm2 = vcmp.lt.s32.totalorder %v1011_v5, 2000  ;;  %v1200_v0 = vmul.f32 %v1136_v1, %v1136_v1  ;;  %v1261_v55 = vadd.f32 %v1260_v17, %v1198_v9  ;;  %v1528_v36 = vld [vmem:[%s1940_s24 + $0x270] sm:$0xff]  ;;  %v3524_v40 = vld [vmem:[#allocation22_spill] sm:$0xff] }
  0xdc   : > { %vm587_vm3 = vcmp.lt.s32.totalorder %v3521_v15, 2000  ;;  %v3523_v60 = vsub.f32 %v2378_v48, %v3522_v14  ;;  %v946_v32 = vsub.f32 %v1462_v63, %v1526_v27  ;;  %v1138_v62 = vsel %vm1074_vm1, %v944_v11, 0.0  ;;  %v3525_v48 = vld [vmem:[#allocation23_spill] sm:$0xff]  ;;  %v1529_v11 = vld [vmem:[%s1940_s24 + $0x278] sm:$0xff]  ;;  %v3526_v14 = vld [vmem:[#allocation77_spill] sm:$0xff] }
  0xdd   : > { %v1014_v23 = vadd.s32 %v2126_v42, %v3524_v40  ;;  %vm1076_vm4 = vcmp.lt.s32.totalorder %v1012_v61, 2000  ;;  %v1201_v9 = vmul.f32 %v1137_v50, %v1137_v50  ;;  %v1262_v22 = vadd.f32 %v1261_v55, %v1199_v59  ;;  %v3527_v50 = vld [vmem:[#allocation85_spill] sm:$0xff]  ;;  %v1467_v61 = vld [vmem:[%s1933_s28 + $0x288] sm:$0xff] }
  0xde   : > { %v650_v53 = vsel %vm586_vm0, %v3523_v60, 0.0  ;;  %v713_v1 = vmul.f32 %v649_v21, %v649_v21  ;;  %v947_v16 = vsub.f32 %v1463_v3, %v1527_v19  ;;  %v1015_v52 = vadd.s32 %v2126_v42, %v3525_v48  ;;  %v3528_v60 = vld [vmem:[#allocation95_spill] sm:$0xff] }
  0xdf   : > { %v1139_v17 = vsel %vm1075_vm2, %v945_v49, 0.0  ;;  %v775_v63 = vadd.f32 %v774_v26, %v712_v24  ;;  %vm1077_vm5 = vcmp.lt.s32.totalorder %v1013_v56, 2000  ;;  %v1202_v27 = vmul.f32 %v1138_v62, %v1138_v62  ;;  %v1466_v49 = vld [vmem:[%s1933_s28 + $0x280] sm:$0xff]  ;;  %v3530_v26 = vld [vmem:[#allocation24_spill] sm:$0xff] }
  0xe0   : > { %v1263_v7 = vadd.f32 %v1262_v22, %v1200_v0  ;;  %vm588_vm6 = vcmp.lt.s32.totalorder %v3526_v14, 2000  ;;  %v3529_v59 = vsub.f32 %v3527_v50, %v3528_v60  ;;  %v948_v3 = vsub.f32 %v1464_v57, %v1528_v36  ;;  %v1530_v24 = vld [vmem:[%s1940_s24 + $0x280] sm:$0xff]  ;;  %v3532_v60 = vld [vmem:[#allocation79_spill] sm:$0xff] }
  0xe1   : > { %v1140_v5 = vsel %vm1076_vm4, %v946_v32, 0.0  ;;  %v1016_v19 = vadd.s32 %v2126_v42, %v3530_v26  ;;  %vm1078_vm7 = vcmp.lt.s32.totalorder %v1014_v23, 2000  ;;  %v1203_v0 = vmul.f32 %v1139_v17, %v1139_v17  ;;  %v3531_v22 = vld [vmem:[#allocation25_spill] sm:$0xff]  ;;  %v1531_v32 = vld [vmem:[%s1940_s24 + $0x288] sm:$0xff]  ;;  %v1469_v23 = vld [vmem:[%s1933_s28 + $0x298] sm:$0xff] }
  0xe2   : > { %v651_v21 = vsel %vm587_vm3, %v3529_v59, 0.0  ;;  %v1264_v55 = vadd.f32 %v1263_v7, %v1201_v9  ;;  %v714_v62 = vmul.f32 %v650_v53, %v650_v53  ;;  %v949_v40 = vsub.f32 %v1465_v18, %v1529_v11  ;;  %v3533_v17 = vld [vmem:[#allocation86_spill] sm:$0xff]  ;;  %v3534_v59 = vld [vmem:[#allocation96_spill] sm:$0xff] }
  0xe3   : > { %v1017_v15 = vadd.s32 %v2126_v42, %v3531_v22  ;;  %v1141_v48 = vsel %vm1077_vm5, %v947_v16, 0.0  ;;  %v776_v57 = vadd.f32 %v775_v63, %v713_v1  ;;  %vm1079_vm8 = vcmp.lt.s32.totalorder %v1015_v52, 2000  ;;  %v1468_v16 = vld [vmem:[%s1933_s28 + $0x290] sm:$0xff]  ;;  %v3536_v63 = vld [vmem:[#allocation26_spill] sm:$0xff] }
  0xe4   : > { %v1204_v36 = vmul.f32 %v1140_v5, %v1140_v5  ;;  %v1265_v50 = vadd.f32 %v1264_v55, %v1202_v27  ;;  %vm589_vm9 = vcmp.lt.s32.totalorder %v3532_v60, 2000  ;;  %v3535_v9 = vsub.f32 %v3533_v17, %v3534_v59  ;;  %v1532_v1 = vld [vmem:[%s1940_s24 + $0x290] sm:$0xff]  ;;  %v3538_v59 = vld [vmem:[#allocation80_spill] sm:$0xff] }
  0xe5   : > { %v950_v18 = vsub.f32 %v1466_v49, %v1530_v24  ;;  %v1142_v56 = vsel %vm1078_vm7, %v948_v3, 0.0  ;;  %v1018_v11 = vadd.s32 %v2126_v42, %v3536_v63  ;;  %vm1080_vm10 = vcmp.lt.s32.totalorder %v1016_v19, 2000  ;;  %v3537_v55 = vld [vmem:[#allocation27_spill] sm:$0xff]  ;;  %v1533_v3 = vld [vmem:[%s1940_s24 + $0x298] sm:$0xff]  ;;  %v1471_v19 = vld [vmem:[%s1933_s28 + $0x2a8] sm:$0xff] }
  0xe6   : > { %v652_v53 = vsel %vm588_vm6, %v3535_v9, 0.0  ;;  %v1205_v27 = vmul.f32 %v1141_v48, %v1141_v48  ;;  %v1266_v7 = vadd.f32 %v1265_v50, %v1203_v0  ;;  %v715_v5 = vmul.f32 %v651_v21, %v651_v21  ;;  %v3539_v48 = vld [vmem:[#allocation98_spill] sm:$0xff] }
  0xe7   : > { %v951_v26 = vsub.f32 %v1467_v61, %v1531_v32  ;;  %v1019_v14 = vadd.s32 %v2126_v42, %v3537_v55  ;;  %v1143_v22 = vsel %vm1079_vm8, %v949_v40, 0.0  ;;  %v777_v49 = vadd.f32 %v776_v57, %v714_v62  ;;  %v1470_v40 = vld [vmem:[%s1933_s28 + $0x2a0] sm:$0xff]  ;;  %v3541_v57 = vld [vmem:[#allocation28_spill] sm:$0xff]  ;;  %v3543_v55 = vld [vmem:[#allocation83_spill] sm:$0xff] }
  0xe8   : > { %vm1081_vm11 = vcmp.lt.s32.totalorder %v1017_v15, 2000  ;;  %v1206_v24 = vmul.f32 %v1142_v56, %v1142_v56  ;;  %v1267_v17 = vadd.f32 %v1266_v7, %v1204_v36  ;;  %vm590_vm12 = vcmp.lt.s32.totalorder %v3538_v59, 2000  ;;  %v1534_v62 = vld [vmem:[%s1940_s24 + $0x2a0] sm:$0xff] }
  0xe9   : > { %v3540_v0 = vsub.f32 %v2406_v31, %v3539_v48  ;;  %v952_v61 = vsub.f32 %v1468_v16, %v1532_v1  ;;  %v1144_v52 = vsel %vm1080_vm10, %v950_v18, 0.0  ;;  %v1020_v32 = vadd.s32 %v2126_v42, %v3541_v57  ;;  %v3542_v31 = vld [vmem:[#allocation29_spill] sm:$0xff]  ;;  %v1535_v18 = vld [vmem:[%s1940_s24 + $0x2a8] sm:$0xff] }
  0xea   : > { %vm1082_vm13 = vcmp.lt.s32.totalorder %v1018_v11, 2000  ;;  %v1207_v36 = vmul.f32 %v1143_v22, %v1143_v22  ;;  %v1268_v50 = vadd.f32 %v1267_v17, %v1205_v27  ;;  %v716_v9 = vmul.f32 %v652_v53, %v652_v53  ;;  %v3544_v22 = vld [vmem:[#allocation99_spill] sm:$0xff]  ;;  %v1473_v11 = vld [vmem:[%s1933_s28 + $0x2b8] sm:$0xff] }
  0xeb   : > { %v653_v21 = vsel %vm589_vm9, %v3540_v0, 0.0  ;;  %v953_v56 = vsub.f32 %v1469_v23, %v1533_v3  ;;  %v1021_v60 = vadd.s32 %v2126_v42, %v3542_v31  ;;  %v1145_v63 = vsel %vm1081_vm11, %v951_v26, 0.0  ;;  %v1472_v26 = vld [vmem:[%s1933_s28 + $0x2b0] sm:$0xff]  ;;  %v3549_v31 = vld [vmem:[#allocation102_spill] sm:$0xff] }
  0xec   : > { %v778_v16 = vadd.f32 %v777_v49, %v715_v5  ;;  %vm1083_vm14 = vcmp.lt.s32.totalorder %v1019_v14, 2000  ;;  %v1208_v1 = vmul.f32 %v1144_v52, %v1144_v52  ;;  %v1269_v7 = vadd.f32 %v1268_v50, %v1206_v24  ;;  %v1536_v5 = vld [vmem:[%s1940_s24 + $0x2b0] sm:$0xff]  ;;  %v3546_v49 = vld [vmem:[#allocation30_spill] sm:$0xff]  ;;  %v3548_v50 = vld [vmem:[#allocation84_spill] sm:$0xff] }
  0xed   : > { %vm591_vm15 = vcmp.lt.s32.totalorder %v3543_v55, 2000  ;;  %v3545_v27 = vsub.f32 %v2409_v6, %v3544_v22  ;;  %v954_v23 = vsub.f32 %v1470_v40, %v1534_v62  ;;  %v1146_v15 = vsel %vm1082_vm13, %v952_v61, 0.0  ;;  %v3547_v6 = vld [vmem:[#allocation31_spill] sm:$0xff]  ;;  %v1537_v61 = vld [vmem:[%s1940_s24 + $0x2b8] sm:$0xff] }
  0xee   : > { %v1022_v3 = vadd.s32 %v2126_v42, %v3546_v49  ;;  %vm1084_vm0 = vcmp.lt.s32.totalorder %v1020_v32, 2000  ;;  %v1209_v24 = vmul.f32 %v1145_v63, %v1145_v63  ;;  %v1270_v17 = vadd.f32 %v1269_v7, %v1207_v36  ;;  %v1475_v32 = vld [vmem:[%s1933_s28 + $0x2c8] sm:$0xff]  ;;  %v3553_v49 = vld [vmem:[#allocation88_spill] sm:$0xff] }
  0xef   : > { %v654_v53 = vsel %vm590_vm12, %v3545_v27, 0.0  ;;  %v717_v48 = vmul.f32 %v653_v21, %v653_v21  ;;  %v955_v0 = vsub.f32 %v1471_v19, %v1535_v18  ;;  %v1023_v59 = vadd.s32 %v2126_v42, %v3547_v6 }
  0xf0   : > { %v1147_v52 = vsel %vm1083_vm14, %v953_v56, 0.0  ;;  %v779_v40 = vadd.f32 %v778_v16, %v716_v9  ;;  %vm1085_vm1 = vcmp.lt.s32.totalorder %v1021_v60, 2000  ;;  %v1210_v62 = vmul.f32 %v1146_v15, %v1146_v15  ;;  %v1474_v56 = vld [vmem:[%s1933_s28 + $0x2c0] sm:$0xff]  ;;  %v3551_v16 = vld [vmem:[#allocation32_spill] sm:$0xff] }
  0xf1   : > { %v1271_v57 = vadd.f32 %v1270_v17, %v1208_v1  ;;  %vm592_vm2 = vcmp.lt.s32.totalorder %v3548_v50, 2000  ;;  %v3550_v36 = vsub.f32 %v2428_v33, %v3549_v31  ;;  %v956_v63 = vsub.f32 %v1472_v26, %v1536_v5  ;;  %v1538_v9 = vld [vmem:[%s1940_s24 + $0x2c0] sm:$0xff]  ;;  %v3554_v17 = vld [vmem:[#allocation103_spill] sm:$0xff] }
  0xf2   : > { %v1148_v14 = vsel %vm1084_vm0, %v954_v23, 0.0  ;;  %v1024_v19 = vadd.s32 %v2126_v42, %v3551_v16  ;;  %vm1086_vm3 = vcmp.lt.s32.totalorder %v1022_v3, 2000  ;;  %v1211_v18 = vmul.f32 %v1147_v52, %v1147_v52  ;;  %v3552_v33 = vld [vmem:[#allocation33_spill] sm:$0xff]  ;;  %v1539_v23 = vld [vmem:[%s1940_s24 + $0x2c8] sm:$0xff]  ;;  %v1477_v3 = vld [vmem:[%s1933_s28 + $0x2d8] sm:$0xff] }
  0xf3   : > { %v655_v21 = vsel %vm591_vm15, %v3550_v36, 0.0  ;;  %v1272_v1 = vadd.f32 %v1271_v57, %v1209_v24  ;;  %v718_v7 = vmul.f32 %v654_v53, %v654_v53  ;;  %v957_v22 = vsub.f32 %v1473_v11, %v1537_v61  ;;  %v3556_v52 = vld [vmem:[#allocation34_spill] sm:$0xff]  ;;  %v3559_v16 = vld [vmem:[#allocation105_spill] sm:$0xff] }
  0xf4   : > { %v1025_v55 = vadd.s32 %v2126_v42, %v3552_v33  ;;  %v1149_v27 = vsel %vm1085_vm1, %v955_v0, 0.0  ;;  %v780_v15 = vadd.f32 %v779_v40, %v717_v48  ;;  %vm1087_vm4 = vcmp.lt.s32.totalorder %v1023_v59, 2000  ;;  %v1476_v0 = vld [vmem:[%s1933_s28 + $0x2d0] sm:$0xff]  ;;  %v3561_v33 = vld [vmem:[#allocation36_spill] sm:$0xff] }
  0xf5   : > { %v1212_v26 = vmul.f32 %v1148_v14, %v1148_v14  ;;  %v1273_v5 = vadd.f32 %v1272_v1, %v1210_v62  ;;  %vm593_vm5 = vcmp.lt.s32.totalorder %v3553_v49, 2000  ;;  %v3555_v24 = vsub.f32 %v2431_v25, %v3554_v17  ;;  %v1540_v48 = vld [vmem:[%s1940_s24 + $0x2d0] sm:$0xff] }
  0xf6   : > { %v958_v6 = vsub.f32 %v1474_v56, %v1538_v9  ;;  %v1150_v60 = vsel %vm1086_vm3, %v956_v63, 0.0  ;;  %v1026_v40 = vadd.s32 %v2126_v42, %v3556_v52  ;;  %vm1088_vm6 = vcmp.lt.s32.totalorder %v1024_v19, 2000  ;;  %v3557_v25 = vld [vmem:[#allocation35_spill] sm:$0xff]  ;;  %v1541_v63 = vld [vmem:[%s1940_s24 + $0x2d8] sm:$0xff]  ;;  %v3558_v9 = vld [vmem:[#allocation89_spill] sm:$0xff] }
  0xf7   : > { %v656_v53 = vsel %vm592_vm2, %v3555_v24, 0.0  ;;  %v1213_v11 = vmul.f32 %v1149_v27, %v1149_v27  ;;  %v1274_v61 = vadd.f32 %v1273_v5, %v1211_v18  ;;  %v719_v62 = vmul.f32 %v655_v21, %v655_v21  ;;  %v1479_v19 = vld [vmem:[%s1933_s28 + $0x2e8] sm:$0xff] }
  0xf8   : > { %v959_v57 = vsub.f32 %v1475_v32, %v1539_v23  ;;  %v1027_v50 = vadd.s32 %v2126_v42, %v3557_v25  ;;  %v1151_v31 = vsel %vm1087_vm4, %v957_v22, 0.0  ;;  %v781_v36 = vadd.f32 %v780_v15, %v718_v7  ;;  %v1478_v22 = vld [vmem:[%s1933_s28 + $0x2e0] sm:$0xff]  ;;  %v1543_v24 = vld [vmem:[%s1940_s24 + $0x2e8] sm:$0xff] }
  0xf9   : > { %vm1089_vm7 = vcmp.lt.s32.totalorder %v1025_v55, 2000  ;;  %v1214_v14 = vmul.f32 %v1150_v60, %v1150_v60  ;;  %v1275_v56 = vadd.f32 %v1274_v61, %v1212_v26  ;;  %vm594_vm8 = vcmp.lt.s32.totalorder %v3558_v9, 2000  ;;  %v1542_v7 = vld [vmem:[%s1940_s24 + $0x2e0] sm:$0xff]  ;;  %v3565_v52 = vld [vmem:[#allocation106_spill] sm:$0xff] }
  0xfa   : > { %v3560_v18 = vsub.f32 %v2447_v47, %v3559_v16  ;;  %v960_v1 = vsub.f32 %v1476_v0, %v1540_v48  ;;  %v1152_v59 = vsel %vm1088_vm6, %v958_v6, 0.0  ;;  %v1028_v27 = vadd.s32 %v2126_v42, %v3561_v33  ;;  %v3562_v47 = vld [vmem:[#allocation37_spill] sm:$0xff]  ;;  %v3563_v0 = vld [vmem:[#allocation90_spill] sm:$0xff] }
  0xfb   : > { %vm1090_vm9 = vcmp.lt.s32.totalorder %v1026_v40, 2000  ;;  %v1215_v15 = vmul.f32 %v1151_v31, %v1151_v31  ;;  %v1276_v32 = vadd.f32 %v1275_v56, %v1213_v11  ;;  %v720_v23 = vmul.f32 %v656_v53, %v656_v53  ;;  %v3564_v48 = vld [vmem:[#allocation97_spill] sm:$0xff]  ;;  %v3567_v25 = vld [vmem:[#allocation38_spill] sm:$0xff]  ;;  %v3568_v56 = vld [vmem:[#allocation39_spill] sm:$0xff] }
  0xfc   : > { %v657_v21 = vsel %vm593_vm5, %v3560_v18, 0.0  ;;  %v961_v26 = vsub.f32 %v1477_v3, %v1541_v63  ;;  %v1029_v5 = vadd.s32 %v2126_v42, %v3562_v47  ;;  %v1153_v49 = vsel %vm1089_vm7, %v959_v57, 0.0  ;;  %v1480_v57 = vld [vmem:[%s1933_s28 + $0x2f0] sm:$0xff]  ;;  %v1481_v40 = vld [vmem:[%s1933_s28 + $0x2f8] sm:$0xff] }
  0xfd   : > { %v782_v17 = vadd.f32 %v781_v36, %v719_v62  ;;  %vm1091_vm10 = vcmp.lt.s32.totalorder %v1027_v50, 2000  ;;  %v1216_v6 = vmul.f32 %v1152_v59, %v1152_v59  ;;  %v1277_v60 = vadd.f32 %v1276_v32, %v1214_v14  ;;  %v1544_v62 = vld [vmem:[%s1940_s24 + $0x2f0] sm:$0xff]  ;;  %v1482_v32 = vld [vmem:[%s1933_s28 + $0x300] sm:$0xff] }
  0xfe   : > { %vm595_vm11 = vcmp.lt.s32.totalorder %v3563_v0, 2000  ;;  %v3566_v11 = vsub.f32 %v3564_v48, %v3565_v52  ;;  %v962_v61 = vsub.f32 %v1478_v22, %v1542_v7  ;;  %v1154_v55 = vsel %vm1090_vm9, %v960_v1, 0.0  ;;  %v1545_v1 = vld [vmem:[%s1940_s24 + $0x2f8] sm:$0xff]  ;;  %v3569_v7 = vld [vmem:[#allocation93_spill] sm:$0xff]  ;;  %v1547_v0 = vld [vmem:[%s1940_s24 + $0x308] sm:$0xff] }
  0xff   : > { %v1030_v31 = vadd.s32 %v2126_v42, %v3567_v25  ;;  %vm1092_vm12 = vcmp.lt.s32.totalorder %v1028_v27, 2000  ;;  %v1217_v36 = vmul.f32 %v1153_v49, %v1153_v49  ;;  %v1278_v3 = vadd.f32 %v1277_v60, %v1215_v15  ;;  %v1483_v27 = vld [vmem:[%s1933_s28 + $0x308] sm:$0xff]  ;;  %v1548_v25 = vld [vmem:[%s1940_s24 + $0x310] sm:$0xff] }
 0x100   : > { %v658_v53 = vsel %vm594_vm8, %v3566_v11, 0.0  ;;  %v721_v63 = vmul.f32 %v657_v21, %v657_v21  ;;  %v963_v14 = vsub.f32 %v1479_v19, %v1543_v24  ;;  %v1031_v9 = vadd.s32 %v2126_v42, %v3568_v56  ;;  %v3573_v11 = vld [vmem:[#allocation100_spill] sm:$0xff] }
 0x101   : > { %v1155_v16 = vsel %vm1091_vm10, %v961_v26, 0.0  ;;  %v783_v18 = vadd.f32 %v782_v17, %v720_v23  ;;  %vm1093_vm13 = vcmp.lt.s32.totalorder %v1029_v5, 2000  ;;  %v1218_v59 = vmul.f32 %v1154_v55, %v1154_v55  ;;  %v1546_v23 = vld [vmem:[%s1940_s24 + $0x300] sm:$0xff]  ;;  %v3571_v26 = vld [vmem:[#allocation40_spill] sm:$0xff] }
 0x102   : > { %v1279_v22 = vadd.f32 %v1278_v3, %v1216_v6  ;;  %vm596_vm14 = vcmp.lt.s32.totalorder %v3569_v7, 2000  ;;  %v3570_v33 = vsub.f32 %v2469_v45, %v2518_v30  ;;  %v964_v15 = vsub.f32 %v1480_v57, %v1544_v62  ;;  %v3572_v30 = vld [vmem:[#allocation41_spill] sm:$0xff]  ;;  %v1484_v62 = vld [vmem:[%s1933_s28 + $0x310] sm:$0xff] }
 0x103   : > { %v1156_v50 = vsel %vm1092_vm12, %v962_v61, 0.0  ;;  %v1032_v47 = vadd.s32 %v2126_v42, %v3571_v26  ;;  %vm1094_vm15 = vcmp.lt.s32.totalorder %v1030_v31, 2000  ;;  %v1219_v49 = vmul.f32 %v1155_v16, %v1155_v16  ;;  %v3574_v61 = vld [vmem:[#allocation108_spill] sm:$0xff]  ;;  %v1486_v26 = vld [vmem:[%s1933_s28 + $0x320] sm:$0xff] }
 0x104   : > { %v659_v21 = vsel %vm595_vm11, %v3570_v33, 0.0  ;;  %v1280_v17 = vadd.f32 %v1279_v22, %v1217_v36  ;;  %v722_v19 = vmul.f32 %v658_v53, %v658_v53  ;;  %v965_v24 = vsub.f32 %v1481_v40, %v1545_v1  ;;  %v3576_v36 = vld [vmem:[#allocation42_spill] sm:$0xff]  ;;  %v1485_v31 = vld [vmem:[%s1933_s28 + $0x318] sm:$0xff] }
 0x105   : > { %v1033_v45 = vadd.s32 %v2126_v42, %v3572_v30  ;;  %v1157_v6 = vsel %vm1093_vm13, %v963_v14, 0.0  ;;  %v784_v60 = vadd.f32 %v783_v18, %v721_v63  ;;  %vm1095_vm0 = vcmp.lt.s32.totalorder %v1031_v9, 2000  ;;  %v3578_v33 = vld [vmem:[#allocation104_spill] sm:$0xff] }
 0x106   : > { %v1220_v48 = vmul.f32 %v1156_v50, %v1156_v50  ;;  %v1281_v52 = vadd.f32 %v1280_v17, %v1218_v59  ;;  %vm597_vm1 = vcmp.lt.s32.totalorder %v3573_v11, 2000  ;;  %v3575_v55 = vsub.f32 %v2472_v39, %v3574_v61  ;;  %v3577_v39 = vld [vmem:[#allocation43_spill] sm:$0xff]  ;;  %v1549_v59 = vld [vmem:[%s1940_s24 + $0x318] sm:$0xff]  ;;  %v3580_v50 = vld [vmem:[#allocation109_spill] sm:$0xff] }
 0x107   : > { %v966_v57 = vsub.f32 %v1482_v32, %v1546_v23  ;;  %v1158_v5 = vsel %vm1094_vm15, %v964_v15, 0.0  ;;  %v1034_v3 = vadd.s32 %v2126_v42, %v3576_v36  ;;  %vm1096_vm2 = vcmp.lt.s32.totalorder %v1032_v47, 2000  ;;  %v3579_v15 = vld [vmem:[#allocation101_spill] sm:$0xff]  ;;  %v3582_v17 = vld [vmem:[#allocation44_spill] sm:$0xff]  ;;  %v1487_v47 = vld [vmem:[%s1933_s28 + $0x328] sm:$0xff] }
 0x108   : > { %v660_v53 = vsel %vm596_vm14, %v3575_v55, 0.0  ;;  %v1221_v63 = vmul.f32 %v1157_v6, %v1157_v6  ;;  %v1282_v14 = vadd.f32 %v1281_v52, %v1219_v49  ;;  %v723_v56 = vmul.f32 %v659_v21, %v659_v21  ;;  %v1550_v49 = vld [vmem:[%s1940_s24 + $0x320] sm:$0xff]  ;;  %v1551_v11 = vld [vmem:[%s1940_s24 + $0x328] sm:$0xff]  ;;  %v1488_v36 = vld [vmem:[%s1933_s28 + $0x330] sm:$0xff] }
 0x109   : > { %v967_v16 = vsub.f32 %v1483_v27, %v1547_v0  ;;  %v1035_v18 = vadd.s32 %v2126_v42, %v3577_v39  ;;  %v1159_v40 = vsel %vm1095_vm0, %v965_v24, 0.0  ;;  %v785_v1 = vadd.f32 %v784_v60, %v722_v19  ;;  %v3583_v27 = vld [vmem:[#allocation45_spill] sm:$0xff] }
 0x10a   : > { %vm1097_vm3 = vcmp.lt.s32.totalorder %v1033_v45, 2000  ;;  %v1222_v22 = vmul.f32 %v1158_v5, %v1158_v5  ;;  %v1283_v7 = vadd.f32 %v1282_v14, %v1220_v48  ;;  %vm598_vm4 = vcmp.lt.s32.totalorder %v3578_v33, 2000  ;;  %v3585_v5 = vld [vmem:[#allocation112_spill] sm:$0xff]  ;;  %v3587_v14 = vld [vmem:[#allocation46_spill] sm:$0xff] }
 0x10b   : > { %v3581_v32 = vsub.f32 %v3579_v15, %v3580_v50  ;;  %v968_v23 = vsub.f32 %v1484_v62, %v1548_v25  ;;  %v1160_v9 = vsel %vm1096_vm2, %v966_v57, 0.0  ;;  %v1036_v19 = vadd.s32 %v2126_v42, %v3582_v17  ;;  %v3584_v57 = vld [vmem:[#allocation107_spill] sm:$0xff]  ;;  %v3589_v50 = vld [vmem:[#allocation113_spill] sm:$0xff] }
 0x10c   : > { %vm1098_vm5 = vcmp.lt.s32.totalorder %v1034_v3, 2000  ;;  %v1223_v24 = vmul.f32 %v1159_v40, %v1159_v40  ;;  %v1284_v30 = vadd.f32 %v1283_v7, %v1221_v63  ;;  %v724_v6 = vmul.f32 %v660_v53, %v660_v53  ;;  %v1552_v63 = vld [vmem:[%s1940_s24 + $0x330] sm:$0xff]  ;;  %v1489_v3 = vld [vmem:[%s1933_s28 + $0x338] sm:$0xff] }
 0x10d   : > { %v661_v21 = vsel %vm597_vm1, %v3581_v32, 0.0  ;;  %v969_v60 = vsub.f32 %v1485_v31, %v1549_v59  ;;  %v1037_v0 = vadd.s32 %v2126_v42, %v3583_v27  ;;  %v1161_v48 = vsel %vm1097_vm3, %v967_v16, 0.0  ;;  %v1553_v7 = vld [vmem:[%s1940_s24 + $0x338] sm:$0xff] }
 0x10e   : > { %v786_v52 = vadd.f32 %v785_v1, %v723_v56  ;;  %vm1099_vm6 = vcmp.lt.s32.totalorder %v1035_v18, 2000  ;;  %v1224_v61 = vmul.f32 %v1160_v9, %v1160_v9  ;;  %v1285_v55 = vadd.f32 %v1284_v30, %v1222_v22  ;;  %v1490_v9 = vld [vmem:[%s1933_s28 + $0x340] sm:$0xff] }
 0x10f   : > { %vm599_vm7 = vcmp.lt.s32.totalorder %v3584_v57, 2000  ;;  %v3586_v62 = vsub.f32 %v2493_v58, %v3585_v5  ;;  %v970_v25 = vsub.f32 %v1486_v26, %v1550_v49  ;;  %v1162_v45 = vsel %vm1098_vm5, %v968_v23, 0.0  ;;  %v3588_v58 = vld [vmem:[#allocation47_spill] sm:$0xff]  ;;  %v1554_v26 = vld [vmem:[%s1940_s24 + $0x340] sm:$0xff]  ;;  %v3591_v49 = vld [vmem:[#allocation48_spill] sm:$0xff] }
 0x110   : > { %v1038_v56 = vadd.s32 %v2126_v42, %v3587_v14  ;;  %vm1100_vm8 = vcmp.lt.s32.totalorder %v1036_v19, 2000  ;;  %v1225_v16 = vmul.f32 %v1161_v48, %v1161_v48  ;;  %v1286_v39 = vadd.f32 %v1285_v55, %v1223_v24  ;;  %v1491_v19 = vld [vmem:[%s1933_s28 + $0x348] sm:$0xff] }
 0x111   : > { %v662_v53 = vsel %vm598_vm4, %v3586_v62, 0.0  ;;  %v725_v40 = vmul.f32 %v661_v21, %v661_v21  ;;  %v971_v1 = vsub.f32 %v1487_v47, %v1551_v11  ;;  %v1039_v31 = vadd.s32 %v2126_v42, %v3588_v58  ;;  %v1492_v62 = vld [vmem:[%s1933_s28 + $0x350] sm:$0xff] }
 0x112   : > { %v1163_v59 = vsel %vm1099_vm6, %v969_v60, 0.0  ;;  %v787_v22 = vadd.f32 %v786_v52, %v724_v6  ;;  %vm1101_vm9 = vcmp.lt.s32.totalorder %v1037_v0, 2000  ;;  %v1226_v33 = vmul.f32 %v1162_v45, %v1162_v45  ;;  %v1555_v52 = vld [vmem:[%s1940_s24 + $0x348] sm:$0xff] }
 0x113   : > { %v1287_v15 = vadd.f32 %v1286_v39, %v1224_v61  ;;  %vm600_vm10 = vcmp.lt.s32.totalorder %v3589_v50, 2000  ;;  %v3590_v32 = vsub.f32 %v2512_v34, %v2562_v38  ;;  %v972_v23 = vsub.f32 %v1488_v36, %v1552_v63  ;;  %v3592_v38 = vld [vmem:[#allocation49_spill] sm:$0xff]  ;;  %v3593_v61 = vld [vmem:[#allocation114_spill] sm:$0xff] }
 0x114   : > { %v1164_v18 = vsel %vm1100_vm8, %v970_v25, 0.0  ;;  %v1040_v17 = vadd.s32 %v2126_v42, %v3591_v49  ;;  %vm1102_vm11 = vcmp.lt.s32.totalorder %v1038_v56, 2000  ;;  %v1227_v24 = vmul.f32 %v1163_v59, %v1163_v59  ;;  %v3595_v25 = vld [vmem:[#allocation50_spill] sm:$0xff]  ;;  %v1493_v56 = vld [vmem:[%s1933_s28 + $0x358] sm:$0xff]  ;;  %v1558_v50 = vld [vmem:[%s1940_s24 + $0x360] sm:$0xff] }
 0x115   : > { %v663_v21 = vsel %vm599_vm7, %v3590_v32, 0.0  ;;  %v1288_v30 = vadd.f32 %v1287_v15, %v1225_v16  ;;  %v726_v6 = vmul.f32 %v662_v53, %v662_v53  ;;  %v973_v60 = vsub.f32 %v1489_v3, %v1553_v7  ;;  %v1556_v53 = vld [vmem:[%s1940_s24 + $0x350] sm:$0xff]  ;;  %v1494_v15 = vld [vmem:[%s1933_s28 + $0x360] sm:$0xff]  ;;  %v3599_v32 = vld [vmem:[#allocation52_spill] sm:$0xff] }
 0x116   : > { %v1041_v34 = vadd.s32 %v2126_v42, %v3592_v38  ;;  %v1165_v27 = vsel %vm1101_vm9, %v971_v1, 0.0  ;;  %v788_v48 = vadd.f32 %v787_v22, %v725_v40  ;;  %vm1103_vm12 = vcmp.lt.s32.totalorder %v1039_v31, 2000  ;;  %v1557_v1 = vld [vmem:[%s1940_s24 + $0x358] sm:$0xff]  ;;  %v3597_v22 = vld [vmem:[#allocation117_spill] sm:$0xff] }
 0x117   : > { %v1228_v47 = vmul.f32 %v1164_v18, %v1164_v18  ;;  %v1289_v11 = vadd.f32 %v1288_v30, %v1226_v33  ;;  %vm601_vm13 = vcmp.lt.s32.totalorder %v3593_v61, 2000  ;;  %v3594_v55 = vsub.f32 %v2515_v35, %v2565_v41  ;;  %v3596_v35 = vld [vmem:[#allocation51_spill] sm:$0xff]  ;;  %v1559_v30 = vld [vmem:[%s1940_s24 + $0x368] sm:$0xff]  ;;  %v3601_v38 = vld [vmem:[#allocation120_spill] sm:$0xff] }
 0x118   : > { %v974_v5 = vsub.f32 %v1490_v9, %v1554_v26  ;;  %v1166_v0 = vsel %vm1102_vm11, %v972_v23, 0.0  ;;  %v1042_v45 = vadd.s32 %v2126_v42, %v3595_v25  ;;  %vm1104_vm14 = vcmp.lt.s32.totalorder %v1040_v17, 2000  ;;  %v1495_v17 = vld [vmem:[%s1933_s28 + $0x368] sm:$0xff]  ;;  %v1560_v61 = vld [vmem:[%s1940_s24 + $0x370] sm:$0xff] }
 0x119   : > { %v664_v57 = vsel %vm600_vm10, %v3594_v55, 0.0  ;;  %v1229_v36 = vmul.f32 %v1165_v27, %v1165_v27  ;;  %v1290_v63 = vadd.f32 %v1289_v11, %v1227_v24  ;;  %v727_v14 = vmul.f32 %v663_v21, %v663_v21  ;;  %v3602_v27 = vld [vmem:[#allocation110_spill] sm:$0xff]  ;;  %v1496_v11 = vld [vmem:[%s1933_s28 + $0x370] sm:$0xff] }
 0x11a   : > { %v975_v16 = vsub.f32 %v1491_v19, %v1555_v52  ;;  %v1043_v41 = vadd.s32 %v2126_v42, %v3596_v35  ;;  %v1167_v39 = vsel %vm1103_vm12, %v973_v60, 0.0  ;;  %v789_v40 = vadd.f32 %v788_v48, %v726_v6  ;;  %v3603_v48 = vld [vmem:[#allocation115_spill] sm:$0xff]  ;;  %v3605_v55 = vld [vmem:[#allocation54_spill] sm:$0xff] }
 0x11b   : > { %vm1105_vm15 = vcmp.lt.s32.totalorder %v1041_v34, 2000  ;;  %v1230_v58 = vmul.f32 %v1166_v0, %v1166_v0  ;;  %v1291_v59 = vadd.f32 %v1290_v63, %v1228_v47  ;;  %vm602_vm0 = vcmp.lt.s32.totalorder %v3597_v22, 2000  ;;  %v3606_v25 = vld [vmem:[#allocation55_spill] sm:$0xff] }
 0x11c   : > { %v3598_v3 = vsub.f32 %v2531_v10, %v2577_v13  ;;  %v976_v33 = vsub.f32 %v1492_v62, %v1556_v53  ;;  %v1168_v31 = vsel %vm1104_vm14, %v974_v5, 0.0  ;;  %v1044_v21 = vadd.s32 %v2126_v42, %v3599_v32  ;;  %v3600_v13 = vld [vmem:[#allocation53_spill] sm:$0xff] }
 0x11d   : > { %vm1106_vm1 = vcmp.lt.s32.totalorder %v1042_v45, 2000  ;;  %v1231_v23 = vmul.f32 %v1167_v39, %v1167_v39  ;;  %v1292_v18 = vadd.f32 %v1291_v59, %v1229_v36  ;;  %v728_v9 = vmul.f32 %v664_v57, %v664_v57  ;;  %v1497_v45 = vld [vmem:[%s1933_s28 + $0x378] sm:$0xff] }
 0x11e   : > { %v665_v7 = vsel %vm601_vm13, %v3598_v3, 0.0  ;;  %v977_v26 = vsub.f32 %v1493_v56, %v1557_v1  ;;  %v1045_v10 = vadd.s32 %v2126_v42, %v3600_v13  ;;  %v1169_v49 = vsel %vm1105_vm15, %v975_v16, 0.0  ;;  %v1561_v16 = vld [vmem:[%s1940_s24 + $0x378] sm:$0xff]  ;;  %v3608_v56 = vld [vmem:[#allocation111_spill] sm:$0xff]  ;;  %v1498_v3 = vld [vmem:[%s1933_s28 + $0x380] sm:$0xff] }
 0x11f   : > { %v790_v24 = vadd.f32 %v789_v40, %v727_v14  ;;  %vm1107_vm2 = vcmp.lt.s32.totalorder %v1043_v41, 2000  ;;  %v1232_v6 = vmul.f32 %v1168_v31, %v1168_v31  ;;  %v1293_v60 = vadd.f32 %v1292_v18, %v1230_v58  ;;  %v3607_v40 = vld [vmem:[#allocation123_spill] sm:$0xff]  ;;  %v3609_v1 = vld [vmem:[#allocation116_spill] sm:$0xff]  ;;  %v3612_v18 = vld [vmem:[#allocation57_spill] sm:$0xff] }
 0x120   : > { %vm603_vm3 = vcmp.lt.s32.totalorder %v3601_v38, 2000  ;;  %v3604_v19 = vsub.f32 %v3602_v27, %v3603_v48  ;;  %v978_v47 = vsub.f32 %v1494_v15, %v1558_v50  ;;  %v1170_v34 = vsel %vm1106_vm1, %v976_v33, 0.0  ;;  %v3611_v33 = vld [vmem:[#allocation56_spill] sm:$0xff]  ;;  %v1500_v38 = vld [vmem:[%s1933_s28 + $0x390] sm:$0xff]  ;;  %v3614_v48 = vld [vmem:[#allocation58_spill] sm:$0xff] }
 0x121   : > { %v1046_v57 = vadd.s32 %v2126_v42, %v3605_v55  ;;  %vm1108_vm4 = vcmp.lt.s32.totalorder %v1044_v21, 2000  ;;  %v1233_v5 = vmul.f32 %v1169_v49, %v1169_v49  ;;  %v1294_v0 = vadd.f32 %v1293_v60, %v1231_v23  ;;  %v1499_v21 = vld [vmem:[%s1933_s28 + $0x388] sm:$0xff]  ;;  %v1564_v27 = vld [vmem:[%s1940_s24 + $0x390] sm:$0xff] }
 0x122   : > { %v666_v52 = vsel %vm602_vm0, %v3604_v19, 0.0  ;;  %v729_v62 = vmul.f32 %v665_v7, %v665_v7  ;;  %v979_v53 = vsub.f32 %v1495_v17, %v1559_v30  ;;  %v1047_v36 = vadd.s32 %v2126_v42, %v3606_v25  ;;  %v1562_v7 = vld [vmem:[%s1940_s24 + $0x380] sm:$0xff]  ;;  %v1563_v49 = vld [vmem:[%s1940_s24 + $0x388] sm:$0xff] }
 0x123   : > { %v1171_v63 = vsel %vm1107_vm2, %v977_v26, 0.0  ;;  %v791_v14 = vadd.f32 %v790_v24, %v728_v9  ;;  %vm1109_vm5 = vcmp.lt.s32.totalorder %v1045_v10, 2000  ;;  %v1234_v35 = vmul.f32 %v1170_v34, %v1170_v34 }
 0x124   : > { %v1295_v39 = vadd.f32 %v1294_v0, %v1232_v6  ;;  %vm604_vm6 = vcmp.lt.s32.totalorder %v3607_v40, 2000  ;;  %v3610_v58 = vsub.f32 %v3608_v56, %v3609_v1  ;;  %v980_v22 = vsub.f32 %v1496_v11, %v1560_v61 }
 0x125   : > { %v1172_v41 = vsel %vm1108_vm4, %v978_v47, 0.0  ;;  %v1048_v31 = vadd.s32 %v2126_v42, %v3611_v33  ;;  %vm1110_vm7 = vcmp.lt.s32.totalorder %v1046_v57, 2000  ;;  %v1235_v15 = vmul.f32 %v1171_v63, %v1171_v63  ;;  %v1501_v57 = vld [vmem:[%s1933_s28 + $0x398] sm:$0xff] }
 0x126   : > { %v667_v59 = vsel %vm603_vm3, %v3610_v58, 0.0  ;;  %v1296_v50 = vadd.f32 %v1295_v39, %v1233_v5  ;;  %v730_v32 = vmul.f32 %v666_v52, %v666_v52  ;;  %v981_v23 = vsub.f32 %v1497_v45, %v1561_v16  ;;  %v1565_v5 = vld [vmem:[%s1940_s24 + $0x398] sm:$0xff]  ;;  %v1566_v45 = vld [vmem:[%s1940_s24 + $0x3a0] sm:$0xff] }
 0x127   : > { %v1049_v9 = vadd.s32 %v2126_v42, %v3612_v18  ;;  %v1173_v26 = vsel %vm1109_vm5, %v979_v53, 0.0  ;;  %v792_v13 = vadd.f32 %v791_v14, %v729_v62  ;;  %vm1111_vm8 = vcmp.lt.s32.totalorder %v1047_v36, 2000  ;;  %v1502_v14 = vld [vmem:[%s1933_s28 + $0x3a0] sm:$0xff]  ;;  %v3617_v16 = vld [vmem:[#allocation60_spill] sm:$0xff] }
 0x128   : > { %v1236_v24 = vmul.f32 %v1172_v41, %v1172_v41  ;;  %v1297_v17 = vadd.f32 %v1296_v50, %v1234_v35  ;;  %vm605_vm9 = vcmp.lt.s32.totalorder %v2681_v29, 2000  ;;  %v3613_v30 = vsub.f32 %v2553_v8, %v2596_v46  ;;  %v3615_v46 = vld [vmem:[#allocation59_spill] sm:$0xff] }
 0x129   : > { %v982_v60 = vsub.f32 %v1498_v3, %v1562_v7  ;;  %v1174_v10 = vsel %vm1110_vm7, %v980_v22, 0.0  ;;  %v1050_v19 = vadd.s32 %v2126_v42, %v3614_v48  ;;  %vm1112_vm10 = vcmp.lt.s32.totalorder %v1048_v31, 2000  ;;  %v1567_v22 = vld [vmem:[%s1940_s24 + $0x3a8] sm:$0xff]  ;;  %v1504_v50 = vld [vmem:[%s1933_s28 + $0x3b0] sm:$0xff]  ;;  %v1506_v48 = vld [vmem:[%s1933_s28 + $0x3c0] sm:$0xff] }
 0x12a   : > { %v668_v6 = vsel %vm604_vm6, %v3613_v30, 0.0  ;;  %v1237_v52 = vmul.f32 %v1173_v26, %v1173_v26  ;;  %v1298_v47 = vadd.f32 %v1297_v17, %v1235_v15  ;;  %v731_v34 = vmul.f32 %v667_v59, %v667_v59  ;;  %v1503_v59 = vld [vmem:[%s1933_s28 + $0x3a8] sm:$0xff]  ;;  %v1569_v17 = vld [vmem:[%s1940_s24 + $0x3b8] sm:$0xff] }
 0x12b   : > { %v983_v11 = vsub.f32 %v1499_v21, %v1563_v49  ;;  %v1051_v8 = vadd.s32 %v2126_v42, %v3615_v46  ;;  %v1175_v61 = vsel %vm1111_vm8, %v981_v23, 0.0  ;;  %v793_v55 = vadd.f32 %v792_v13, %v730_v32  ;;  %v1568_v32 = vld [vmem:[%s1940_s24 + $0x3b0] sm:$0xff]  ;;  %v3620_v23 = vld [vmem:[#allocation62_spill] sm:$0xff] }
 0x12c   : > { %vm1113_vm11 = vcmp.lt.s32.totalorder %v1049_v9, 2000  ;;  %v1238_v0 = vmul.f32 %v1174_v10, %v1174_v10  ;;  %v1299_v62 = vadd.f32 %v1298_v47, %v1236_v24  ;;  %vm606_vm12 = vcmp.lt.s32.totalorder %v2687_v2, 2000  ;;  %v1505_v24 = vld [vmem:[%s1933_s28 + $0x3b8] sm:$0xff] }
 0x12d   : > { %v3616_v53 = vsub.f32 %v2556_v28, %v2599_v20  ;;  %v984_v63 = vsub.f32 %v1500_v38, %v1564_v27  ;;  %v1176_v36 = vsel %vm1112_vm10, %v982_v60, 0.0  ;;  %v1052_v35 = vadd.s32 %v2126_v42, %v3617_v16  ;;  %v3618_v20 = vld [vmem:[#allocation61_spill] sm:$0xff] }
 0x12e   : > { %vm1114_vm13 = vcmp.lt.s32.totalorder %v1050_v19, 2000  ;;  %v1239_v39 = vmul.f32 %v1175_v61, %v1175_v61  ;;  %v1300_v40 = vadd.f32 %v1299_v62, %v1237_v52  ;;  %v732_v56 = vmul.f32 %v668_v6, %v668_v6  ;;  %v1570_v19 = vld [vmem:[%s1940_s24 + $0x3c0] sm:$0xff]  ;;  %v3623_v52 = vld [vmem:[#allocation64_spill] sm:$0xff]  ;;  %v1507_v61 = vld [vmem:[%s1933_s28 + $0x3c8] sm:$0xff] }
 0x12f   : > { %v669_v25 = vsel %vm605_vm9, %v3616_v53, 0.0  ;;  %v985_v1 = vsub.f32 %v1501_v57, %v1565_v5  ;;  %v1053_v28 = vadd.s32 %v2126_v42, %v3618_v20  ;;  %v1177_v29 = vsel %vm1113_vm11, %v983_v11, 0.0  ;;  %v3625_v62 = vld [vmem:[#allocation118_spill] sm:$0xff]  ;;  %v3626_v53 = vld [vmem:[#allocation121_spill] sm:$0xff] }
 0x130   : > { %v794_v58 = vadd.f32 %v793_v55, %v731_v34  ;;  %vm1115_vm14 = vcmp.lt.s32.totalorder %v1051_v8, 2000  ;;  %v1240_v41 = vmul.f32 %v1176_v36, %v1176_v36  ;;  %v1301_v3 = vadd.f32 %v1300_v40, %v1238_v0  ;;  %v1571_v55 = vld [vmem:[%s1940_s24 + $0x3c8] sm:$0xff]  ;;  %v3628_v16 = vld [vmem:[#allocation65_spill] sm:$0xff] }
 0x131   : > { %vm607_vm15 = vcmp.lt.s32.totalorder %v2701_v37, 2000  ;;  %v3619_v7 = vsub.f32 %v2559_v44, %v2602_v43  ;;  %v986_v31 = vsub.f32 %v1502_v14, %v1566_v45  ;;  %v1178_v15 = vsel %vm1114_vm13, %v984_v63, 0.0  ;;  %v3621_v44 = vld [vmem:[#allocation63_spill] sm:$0xff]  ;;  %v3624_v0 = vld [vmem:[#allocation126_spill] sm:$0xff] }
 0x132   : > { %v1054_v18 = vadd.s32 %v2126_v42, %v3620_v23  ;;  %vm1116_vm0 = vcmp.lt.s32.totalorder %v1052_v35, 2000  ;;  %v1241_v9 = vmul.f32 %v1177_v29, %v1177_v29  ;;  %v1302_v26 = vadd.f32 %v1301_v3, %v1239_v39  ;;  %v1508_v14 = vld [vmem:[%s1933_s28 + $0x3d0] sm:$0xff]  ;;  %v3629_v20 = vld [vmem:[#allocation66_spill] sm:$0xff]  ;;  %v1510_v23 = vld [vmem:[%s1933_s28 + $0x3e0] sm:$0xff] }
 0x133   : > { %v670_v33 = vsel %vm606_vm12, %v3619_v7, 0.0  ;;  %v733_v13 = vmul.f32 %v669_v25, %v669_v25  ;;  %v987_v21 = vsub.f32 %v1503_v59, %v1567_v22  ;;  %v1055_v43 = vadd.s32 %v2126_v42, %v3621_v44  ;;  %v1572_v45 = vld [vmem:[%s1940_s24 + $0x3d0] sm:$0xff]  ;;  %v1573_v59 = vld [vmem:[%s1940_s24 + $0x3d8] sm:$0xff] }
 0x134   : > { %v1179_v2 = vsel %vm1115_vm14, %v985_v1, 0.0  ;;  %v795_v49 = vadd.f32 %v794_v58, %v732_v56  ;;  %vm1117_vm1 = vcmp.lt.s32.totalorder %v1053_v28, 2000  ;;  %v1242_v30 = vmul.f32 %v1178_v15, %v1178_v15  ;;  %v1509_v58 = vld [vmem:[%s1933_s28 + $0x3d8] sm:$0xff]  ;;  %v3630_v3 = vld [vmem:[#allocation71_spill] sm:$0xff] }
 0x135   : > { %v1303_v6 = vadd.f32 %v1302_v26, %v1240_v41  ;;  %vm608_vm2 = vcmp.lt.s32.totalorder %v2705_v4, 2000  ;;  %v3622_v60 = vsub.f32 %v2608_v54, %v2630_v51  ;;  %v988_v38 = vsub.f32 %v1504_v50, %v1568_v32  ;;  %v3631_v7 = vld [vmem:[#allocation119_spill] sm:$0xff] }
 0x136   : > { %v1180_v27 = vsel %vm1116_vm0, %v986_v31, 0.0  ;;  %v1056_v47 = vadd.s32 %v2126_v42, %v3623_v52  ;;  %vm1118_vm3 = vcmp.lt.s32.totalorder %v1054_v18, 2000  ;;  %v1243_v34 = vmul.f32 %v1179_v2, %v1179_v2  ;;  %v1574_v18 = vld [vmem:[%s1940_s24 + $0x3e0] sm:$0xff]  ;;  %v3635_v2 = vld [vmem:[#allocation68_spill] sm:$0xff] }
 0x137   : > { %v671_v10 = vsel %vm607_vm15, %v3622_v60, 0.0  ;;  %v1304_v11 = vadd.f32 %v1303_v6, %v1241_v9  ;;  %v734_v46 = vmul.f32 %v670_v33, %v670_v33  ;;  %v989_v8 = vsub.f32 %v1505_v24, %v1569_v17  ;;  %v3632_v33 = vld [vmem:[#allocation122_spill] sm:$0xff]  ;;  %v3634_v9 = vld [vmem:[#allocation67_spill] sm:$0xff]  ;;  %v3638_v52 = vld [vmem:[#allocation124_spill] sm:$0xff] }
 0x138   : > { %v1057_v54 = vadd.s32 %v2126_v42, %v2234_v12  ;;  %v1181_v37 = vsel %vm1117_vm1, %v987_v21, 0.0  ;;  %v796_v51 = vadd.f32 %v795_v49, %v733_v13  ;;  %vm1119_vm4 = vcmp.lt.s32.totalorder %v1055_v43, 2000  ;;  %v1575_v6 = vld [vmem:[%s1940_s24 + $0x3e8] sm:$0xff] }
 0x139   : > { %v1244_v57 = vmul.f32 %v1180_v27, %v1180_v27  ;;  %v1305_v5 = vadd.f32 %v1304_v11, %v1242_v30  ;;  %vm609_vm5 = vcmp.lt.s32.totalorder %v3624_v0, 2000  ;;  %v3627_v25 = vsub.f32 %v3625_v62, %v3626_v53  ;;  %v1511_v30 = vld [vmem:[%s1933_s28 + $0x3e8] sm:$0xff] }
 0x13a   : > { %v990_v36 = vsub.f32 %v1506_v48, %v1570_v19  ;;  %v1182_v12 = vsel %vm1118_vm3, %v988_v38, 0.0  ;;  %v1058_v35 = vadd.s32 %v2126_v42, %v3628_v16  ;;  %vm1120_vm6 = vcmp.lt.s32.totalorder %v1056_v47, 2000  ;;  %v288_v38 = vld [vmem:[%s1933_s28 + $0x1f8] sm:$0xff]  ;;  %v3636_v27 = vld [vmem:[#allocation70_spill] sm:$0xff]  ;;  %v3637_v48 = vld [vmem:[#allocation11_spill] sm:$0xff] }
 0x13b   : > { %v672_v63 = vsel %vm608_vm2, %v3627_v25, 0.0  ;;  %v1245_v39 = vmul.f32 %v1181_v37, %v1181_v37  ;;  %v1306_v40 = vadd.f32 %v1305_v5, %v1243_v34  ;;  %v735_v56 = vmul.f32 %v671_v10, %v671_v10  ;;  %v3639_v47 = vld [vmem:[#allocation125_spill] sm:$0xff]  ;;  %v1512_v37 = vld [vmem:[%s1933_s28 + $0x3f0] sm:$0xff] }
 0x13c   : > { %v991_v1 = vsub.f32 %v1507_v61, %v1571_v55  ;;  %v1059_v4 = vadd.s32 %v2126_v42, %v3629_v20  ;;  %v1183_v28 = vsel %vm1119_vm4, %v989_v8, 0.0  ;;  %v797_v29 = vadd.f32 %v796_v51, %v734_v46  ;;  %v1576_v51 = vld [vmem:[%s1940_s24 + $0x3f0] sm:$0xff]  ;;  %v3641_v61 = vld [vmem:[#allocation69_spill] sm:$0xff] }
 0x13d   : > { %vm1121_vm7 = vcmp.lt.s32.totalorder %v1057_v54, 2000  ;;  %v1246_v22 = vmul.f32 %v1182_v12, %v1182_v12  ;;  %v1307_v41 = vadd.f32 %v1306_v40, %v1244_v57  ;;  %vm610_vm8 = vcmp.lt.s32.totalorder %v3630_v3, 2000  ;;  %v352_v54 = vld [vmem:[%s1940_s24 + $0x1f8] sm:$0xff] }
 0x13e   : > { %v3633_v31 = vsub.f32 %v3631_v7, %v3632_v33  ;;  %v992_v50 = vsub.f32 %v1508_v14, %v1572_v45  ;;  %v1184_v32 = vsel %vm1120_vm6, %v990_v36, 0.0  ;;  %v1060_v26 = vadd.s32 %v2126_v42, %v3634_v9  ;;  %v1513_v36 = vld [vmem:[%s1933_s28 + $0x3f8] sm:$0xff] }
 0x13f   : > { %vm1122_vm9 = vcmp.lt.s32.totalorder %v1058_v35, 2000  ;;  %v1247_v13 = vmul.f32 %v1183_v28, %v1183_v28  ;;  %v1308_v21 = vadd.f32 %v1307_v41, %v1245_v39  ;;  %v736_v44 = vmul.f32 %v672_v63, %v672_v63  ;;  %v1577_v12 = vld [vmem:[%s1940_s24 + $0x3f8] sm:$0xff] }
 0x140   : > { %v673_v15 = vsel %vm609_vm5, %v3633_v31, 0.0  ;;  %v993_v43 = vsub.f32 %v1509_v58, %v1573_v59  ;;  %v1061_v49 = vadd.s32 %v2126_v42, %v3635_v2  ;;  %v1185_v24 = vsel %vm1121_vm7, %v991_v1, 0.0 }
 0x141   : > { %v798_v17 = vadd.f32 %v797_v29, %v735_v56  ;;  %vm1123_vm10 = vcmp.lt.s32.totalorder %v1059_v4, 2000  ;;  %v1248_v60 = vmul.f32 %v1184_v32, %v1184_v32  ;;  %v1309_v10 = vadd.f32 %v1308_v21, %v1246_v22 }
 0x142   : > { %v547_v19 = vadd.s32 %v3637_v48, %v3636_v27  ;;  %v3640_v34 = vsub.f32 %v3638_v52, %v3639_v47  ;;  %v994_v46 = vsub.f32 %v1510_v23, %v1574_v18  ;;  %v1186_v8 = vsel %vm1122_vm9, %v992_v50, 0.0 }
 0x143   : > { %v1062_v55 = vadd.s32 %v2126_v42, %v3641_v61  ;;  %vm1124_vm11 = vcmp.lt.s32.totalorder %v1060_v26, 2000  ;;  %v1249_v57 = vmul.f32 %v1185_v24, %v1185_v24  ;;  %v1310_v5 = vadd.f32 %v1309_v10, %v1247_v13 }
 0x144   : > { %v674_v11 = vsel %vm610_vm8, %v3640_v34, 0.0  ;;  %v737_v0 = vmul.f32 %v673_v15, %v673_v15  ;;  %v995_v62 = vsub.f32 %v1511_v30, %v1575_v6  ;;  %v1063_v53 = vadd.s32 %v2126_v42, %v3636_v27 }
 0x145   : > { %v1187_v25 = vsel %vm1123_vm10, %v993_v43, 0.0  ;;  %v799_v63 = vadd.f32 %v798_v17, %v736_v44  ;;  %vm1125_vm12 = vcmp.lt.s32.totalorder %v1061_v49, 2000  ;;  %v1250_v14 = vmul.f32 %v1186_v8, %v1186_v8 }
 0x146   : > { %v1311_v45 = vadd.f32 %v1310_v5, %v1248_v60  ;;  %v416_v16 = vsub.f32 %v288_v38, %v352_v54  ;;  %v996_v35 = vsub.f32 %v1512_v37, %v1576_v51  ;;  %v1188_v39 = vsel %vm1124_vm11, %v994_v46, 0.0 }
 0x147   : > { %vm611_vm13 = vcmp.lt.s32.totalorder %v547_v19, 2000  ;;  %vm1126_vm14 = vcmp.lt.s32.totalorder %v1062_v55, 2000  ;;  %v1251_v40 = vmul.f32 %v1187_v25, %v1187_v25  ;;  %v738_v1 = vmul.f32 %v674_v11, %v674_v11 }
 0x148   : > { %v1312_v56 = vadd.f32 %v1311_v45, %v1249_v57  ;;  %v997_v20 = vsub.f32 %v1513_v36, %v1577_v12  ;;  %v1189_v28 = vsel %vm1125_vm12, %v995_v62, 0.0  ;;  %v800_v42 = vadd.f32 %v799_v63, %v737_v0 }
 0x149   : > { %vm1127_vm15 = vcmp.lt.s32.totalorder %v1063_v53, 2000  ;;  %v1252_v4 = vmul.f32 %v1188_v39, %v1188_v39  ;;  %v675_v58 = vsel %vm611_vm13, %v416_v16, 0.0  ;;  %v1190_v59 = vsel %vm1126_vm14, %v996_v35, 0.0 }
 0x14a   : > { %v1313_v29 = vadd.f32 %v1312_v56, %v1250_v14  ;;  %v1253_v22 = vmul.f32 %v1189_v28, %v1189_v28  ;;  %v1191_v3 = vsel %vm1127_vm15, %v997_v20, 0.0  ;;  %v739_v7 = vmul.f32 %v675_v58, %v675_v58 }
 0x14b   : > { %v801_v33 = vadd.f32 %v800_v42, %v738_v1  ;;  %v1254_v31 = vmul.f32 %v1190_v59, %v1190_v59  ;;  %v1255_v50 = vmul.f32 %v1191_v3, %v1191_v3 }
 0x14c   : > { %v1314_v41 = vadd.f32 %v1313_v29, %v1251_v40 }
 0x14d   : > { %v802_v23 = vadd.f32 %v801_v33, %v739_v7 }
 0x14e   : > { %v1315_v15 = vadd.f32 %v1314_v41, %v1252_v4 }
 0x150   : > { %v1316_v32 = vadd.f32 %v1315_v15, %v1253_v22 }
 0x152   : > { %v1317_v18 = vadd.f32 %v1316_v32, %v1254_v31 }
 0x154   : > { %v1318_v9 = vadd.f32 %v1317_v18, %v1255_v50 }
 0x156   : > { %v1319_v26 = vadd.f32 %v1318_v9, %v802_v23 }
 0x158   : > { %1320 = vst [vmem:[%s213_s3] sm:$0xff] %v1319_v26 }
 0x159   : > { %1698 = shalt.err (!%p1695_p10)
}
 0x15a   : > { %s1699_s29 = scalar_lea.hbm %s3203_s14, 128  ;;  %s1703_s28 = scalar_lea.hbm %s3249_s2, 256 }
 0x15b   : > { %p1700_p11 = scmp.ne.s32.totalorder %s3203_s14, %s1699_s29  ;;  %p1704_p13 = scmp.lt.u32.totalorder %s3203_s14, %s3249_s2 }
 0x15c   : > { %p1705_p12 = scmp.lt.u32.totalorder %s1703_s28, %s1699_s29  ;;  %p1707_p6 = scmp.lt.u32.totalorder %s1699_s29, %s3203_s14 }
 0x15d   : > { %p1701_p2 = pnand %p1700_p11, %p3642_p5 }
 0x15e   : > { %p1706_p0 = por %p1705_p12, %p1704_p13 }
 0x15f   : > { %p1702_p8 = pneg %p1701_p2 }
 0x160   : > { %p1708_p1 = por %p1707_p6, %p1706_p0 }
 0x162   : > { %p1709_p3 = pnand %p1708_p1, %p1702_p8 }
 0x164   : > { %1712 = shalt.err (!%p1709_p3)
}
 0x165   : > { %1586 = dma.vmem_to_hbm [thread:$0]  (%p3642_p5), %s3205_s4, 128, %s3203_s14, %s1322_s16  }
 0x166 PF: > { %s1347_s7 = sand.u32 1, %s1743_s9   ;;  %p3643_p4 = scmp.ne.s32.totalorder %s3372_s22, 0 }
 0x167   : > { %p3644_p7 = scmp.ge.s32.totalorder %s1755_s12, 2  ;;  %s1348_s20 = scalar_lea.sflag [#allocation4], %s1347_s7 }
 0x169   : > { %p1589_p9 = pnand %p3644_p7, %p3643_p4 }
 0x16b   : > { %1738 = dma.done.wait (!%p1589_p9), %s1348_s20, 128  }
 0x16c   : > { %1740 = vsyncadd (!%p1589_p9), %s1348_s20, 4294967168  ;;  %p18_p10 = scmp.ge.s32.totalorder %s1804_s15, 4   ;;  %s3645_s9 = smov %s1747_s10 }
 0x16d   : > { %s3646_s10 = smov %s1751_s11  ;;  %s3647_s11 = smov %s1816_s18 }
 0x16e   : > { %s3648_s12 = smov %s1804_s15  ;;  %20 = sbr.rel (!%p18_p10) target bundleno = 7 (0x7), region = 88 }
 0x175   :  { %1353 = vsyncpa [#allocation3], 1 }
 0x176   :  { %1355 = vsyncpa [#allocation3 + $0x1], 1 }
 0x177   :  { %1356 = vsyncpa [#allocation6], 1 }
 0x178   :  { %1358 = vsyncpa [#allocation6 + $0x1], 1 }
 0x179   :  { %1359 = vsyncpa [#allocation4], 1 }
 0x17a   :  { %1361 = vsyncpa [#allocation4 + $0x1], 1 }

</bundles_post_ra>
